<compile_context>
chip_gen: v6e
topology: v6e:2x2x1
jax: 0.10.0
libtpu: 0.0.40
codegen_flags: <defaults>
</compile_context>

<pallas_src>
import jax
import jax.numpy as jnp
from jax.experimental import pallas as pl
from jax.experimental.pallas import tpu as pltpu

LANE = 128      # TPU lane width: every matmul N (and padded K) dimension is a multiple of this
SUBLANE = 8     # f32 sublane quantum: batch is padded to a multiple of this


# ---------------------------------------------------------------------------
# Kernel: one decode step per grid iteration, hidden carried in VMEM scratch.
# ---------------------------------------------------------------------------
def decoder_kernel(
    emb_ref,      # [1, Bp, LANE]    bf16  step-t embedded token (lanes E: are zero)
    enc_ref,      # [Bp, S, LANE]    bf16  encoder outputs, batch-major (lanes 2H: are zero)
    e_enc_ref,    # [Bp, S, LANE]    f32   precomputed enc @ W_a_enc (lanes H: are zero)
    vw_ref,       # [1, LANE]        f32   v row vector (v bias dropped: softmax shift-invariant)
    h0_ref,       # [Bp, LANE]       f32   initial hidden (lanes H: are zero)
    w_hid_ref,    # [LANE, 4*LANE]   bf16  fused hidden-side weight [attn_h | gru_hr | gru_hz | gru_hn]
    b_hid_ref,    # [1, 4*LANE]      f32
    w_ec_ref,     # [2*LANE, 5*LANE] bf16  fused [emb|ctx] weight [gru_r | gru_z | gru_n | mx_even | mx_odd]
    b_ec_ref,     # [1, 5*LANE]      f32
    wm_h_ref,     # [LANE, 2*LANE]   bf16  maxout, h_new part ([even | odd] halves)
    wo_ref,       # [LANE, Vp]       bf16  fc_out^T (rows D: are zero)
    bo_ref,       # [1, Vp]          f32
    pred_ref,     # out: [1, Bp, Vp] f32   per-step prediction (lane-dense)
    hid_ref,      # out: [Bp, LANE]  f32   final hidden (resident: constant block index)
    h_sc,         # scratch: [Bp, LANE] f32  hidden carried across decode steps
):
    f32, bf16 = jnp.float32, jnp.bfloat16
    t = pl.program_id(0)

    @pl.when(t == 0)
    def _():
        h_sc[...] = h0_ref[...]

    hid = h_sc[...]                                             # [Bp, LANE] f32 (lanes H: zero)
    hid_b = hid.astype(bf16)

    # --- hidden-side fused matmul: attention h-part + GRU hidden gates (one MXU push) ---
    hh = jnp.dot(hid_b, w_hid_ref[...], preferred_element_type=f32) + b_hid_ref[...]  # [Bp, 4*LANE]
    h_part = hh[:, 0:LANE]
    gh_r = hh[:, LANE:2 * LANE]
    gh_z = hh[:, 2 * LANE:3 * LANE]
    gh_n = hh[:, 3 * LANE:4 * LANE]

    # --- additive attention; scores [Bp, S] -> softmax over the lane axis ---
    e = jnp.tanh(e_enc_ref[...] + h_part[:, None, :])           # [Bp, S, LANE]
    scores = jnp.sum(e * vw_ref[...][None, :, :], axis=-1)      # [Bp, S]
    scores = scores - jnp.max(scores, axis=-1, keepdims=True)
    p = jnp.exp(scores)
    attn = p * pl.reciprocal(jnp.sum(p, axis=-1, keepdims=True), approx=True)          # [Bp, S]

    # --- context: VPU weighted sum over S (f32 accumulate); lanes 2H: stay zero ---
    ctx = jnp.sum(attn[:, :, None] * enc_ref[...].astype(f32), axis=1)                 # [Bp, LANE]

    # --- fused [emb | ctx] activation (K=256) -> GRU input gates + maxout emb/ctx part ---
    emb = emb_ref[0]                                            # [Bp, LANE] bf16
    ec = jnp.concatenate([emb, ctx.astype(bf16)], axis=-1)      # [Bp, 2*LANE] bf16
    gm = jnp.dot(ec, w_ec_ref[...], preferred_element_type=f32) + b_ec_ref[...]        # [Bp, 5*LANE]

    # --- GRU step (gate order r, z, n; one 128-lane block per gate) ---
    r = jax.nn.sigmoid(gm[:, 0:LANE] + gh_r)
    z = jax.nn.sigmoid(gm[:, LANE:2 * LANE] + gh_z)
    n = jnp.tanh(gm[:, 2 * LANE:3 * LANE] + r * gh_n)
    h_new = (1.0 - z) * n + z * hid                             # [Bp, LANE]; pad lanes stay 0

    # --- maxout ([even | odd] halves) + output projection ---
    my = gm[:, 3 * LANE:5 * LANE] + jnp.dot(h_new.astype(bf16), wm_h_ref[...],
                                            preferred_element_type=f32)                # [Bp, 2*LANE]
    m = jnp.maximum(my[:, 0:LANE], my[:, LANE:2 * LANE])        # [Bp, LANE]

    pred_ref[0] = jnp.dot(m.astype(bf16), wo_ref[...], preferred_element_type=f32) + bo_ref[...]
    h_sc[...] = h_new
    hid_ref[...] = h_new


def _round_up(x, m):
    return ((x + m - 1) // m) * m


# ---------------------------------------------------------------------------
# Parameters (PyTorch layout) + one-time fusion/padding into kernel layout.
# ---------------------------------------------------------------------------
def init_raw_params(key, output_dim, embed_dim, hidden, deep_dim):
    """Parameters in PyTorch layout (Linear weights are [out, in])."""
    E, H, D, V = embed_dim, hidden, deep_dim, output_dim
    ks = iter(jax.random.split(key, 16))

    def w(shape, scale=0.1):
        return (scale * jax.random.normal(next(ks), shape)).astype(jnp.float32)

    return {
        "embedding": w((V, E)),
        "W_s_w": w((H, H)), "W_s_b": w((H,)),
        "attn_w": w((H, 3 * H)), "attn_b": w((H,)),
        "v_w": w((1, H)), "v_b": w((1,)),          # v_b never affects the softmax output
        "gru_w_ih": w((3 * H, E + 2 * H)), "gru_b_ih": w((3 * H,)),
        "gru_w_hh": w((3 * H, H)), "gru_b_hh": w((3 * H,)),
        "maxout_w": w((2 * D, E + 3 * H)), "maxout_b": w((2 * D,)),
        "fc_out_w": w((V, D)), "fc_out_b": w((V,)),
    }


def prepare_params(raw):
    """One-time weight fusion / transposition / lane & K padding / bf16 cast.

    Every pad region starts from jnp.zeros and is never written, so the kernel's
    zero-pad invariants (pad lanes of hidden / maxout / scores stay exactly 0) hold
    by construction."""
    f32, bf16 = jnp.float32, jnp.bfloat16
    V, E = raw["embedding"].shape
    H = raw["W_s_w"].shape[0]
    D = raw["maxout_w"].shape[0] // 2
    assert E <= LANE and H <= LANE and D <= LANE and 2 * H <= LANE, \
        "single-128-lane-block packing assumes E, H, D, 2H <= 128"
    Vp = _round_up(V, LANE)

    aw, ab = raw["attn_w"], raw["attn_b"]                       # [H, 3H], [H]

    # Encoder part of the alignment layer; used once per sequence in the wrapper (hoisted).
    wae = jnp.zeros((2 * H, LANE), f32).at[:, :H].set(aw[:, H:].T)
    vw = jnp.zeros((1, LANE), f32).at[0, :H].set(raw["v_w"][0])

    # Hidden-side fused weight: [ attn_h | gru_hr | gru_hz | gru_hn ], K padded H -> 128.
    whh, bhh = raw["gru_w_hh"], raw["gru_b_hh"]
    w_hid = jnp.zeros((LANE, 4 * LANE), f32).at[:H, :H].set(aw[:, :H].T)
    b_hid = jnp.zeros((1, 4 * LANE), f32).at[0, :H].set(ab)
    for g in range(3):                                          # gate order (r, z, n)
        rows, off = slice(g * H, (g + 1) * H), (g + 1) * LANE
        w_hid = w_hid.at[:H, off:off + H].set(whh[rows].T)
        b_hid = b_hid.at[0, off:off + H].set(bhh[rows])

    # [emb | ctx] fused weight: K = 256 (rows 0:E emb, 128:128+2H ctx),
    # N = 5*128 = [ gru_r | gru_z | gru_n | maxout_even | maxout_odd ].
    wih, bih = raw["gru_w_ih"], raw["gru_b_ih"]                 # [3H, E+2H], [3H]
    mw, mb = raw["maxout_w"], raw["maxout_b"]                   # [2D, E+3H], [2D]
    w_even, w_odd = mw[0::2], mw[1::2]                          # [D, E+3H] each
    b_even, b_odd = mb[0::2], mb[1::2]
    w_ec = jnp.zeros((2 * LANE, 5 * LANE), f32)
    b_ec = jnp.zeros((1, 5 * LANE), f32)
    for g in range(3):
        rows, off = slice(g * H, (g + 1) * H), g * LANE
        w_ec = w_ec.at[:E, off:off + H].set(wih[rows, :E].T)
        w_ec = w_ec.at[LANE:LANE + 2 * H, off:off + H].set(wih[rows, E:].T)
        b_ec = b_ec.at[0, off:off + H].set(bih[rows])
    # Maxout input order is cat(emb, h_new, ctx): emb cols 0:E, h cols E:E+H, ctx cols E+H:E+3H.
    w_ec = w_ec.at[:E, 3 * LANE:3 * LANE + D].set(w_even[:, :E].T)
    w_ec = w_ec.at[LANE:LANE + 2 * H, 3 * LANE:3 * LANE + D].set(w_even[:, E + H:].T)
    w_ec = w_ec.at[:E, 4 * LANE:4 * LANE + D].set(w_odd[:, :E].T)
    w_ec = w_ec.at[LANE:LANE + 2 * H, 4 * LANE:4 * LANE + D].set(w_odd[:, E + H:].T)
    b_ec = b_ec.at[0, 3 * LANE:3 * LANE + D].set(b_even)
    b_ec = b_ec.at[0, 4 * LANE:4 * LANE + D].set(b_odd)

    # Maxout h_new part, K padded H -> 128.
    wm_h = jnp.zeros((LANE, 2 * LANE), f32)
    wm_h = wm_h.at[:H, :D].set(w_even[:, E:E + H].T)
    wm_h = wm_h.at[:H, LANE:LANE + D].set(w_odd[:, E:E + H].T)

    # Output projection, K padded D -> 128, N padded V -> Vp.
    wo = jnp.zeros((LANE, Vp), f32).at[:D, :V].set(raw["fc_out_w"].T)
    bo = jnp.zeros((1, Vp), f32).at[0, :V].set(raw["fc_out_b"])

    return {
        "emb_table": raw["embedding"].astype(bf16),
        "ws": raw["W_s_w"], "bs": raw["W_s_b"],     # f32; used once per sequence in the wrapper
        "wae": wae, "vw": vw,
        "w_hid": w_hid.astype(bf16), "b_hid": b_hid,
        "w_ec": w_ec.astype(bf16), "b_ec": b_ec,
        "wm_h": wm_h.astype(bf16),
        "wo": wo.astype(bf16), "bo": bo,
    }


# ---------------------------------------------------------------------------
# Wrappers: once-per-sequence prep + one fused pallas_call over T decode steps.
# ---------------------------------------------------------------------------
def _decoder_decode(prepped, encoder_outputs, tokens, hidden=None):
    """encoder_outputs: [S, B, 2H] f32; tokens: [T, B] int32 (teacher forcing);
    hidden: optional [1, B, H]. Returns (predictions [T, B, V], next_hidden [1, B, H])."""
    S, B, H2 = encoder_outputs.shape
    H = H2 // 2
    T = tokens.shape[0]
    V, E = prepped["emb_table"].shape
    Vp = prepped["wo"].shape[1]
    Bp = max(SUBLANE, _round_up(B, SUBLANE))

    # ---- once-per-sequence prep (hoisted out of the per-step path) ----
    enc_bm = jnp.transpose(encoder_outputs, (1, 0, 2))          # [B, S, 2H] f32
    enc = jnp.zeros((Bp, S, LANE), jnp.bfloat16).at[:B, :, :H2].set(enc_bm.astype(jnp.bfloat16))
    # Step-invariant encoder projection of the additive attention (f32, computed once).
    e_enc = jnp.zeros((Bp, S, LANE), jnp.float32).at[:B].set(
        jnp.einsum("bsh,hk->bsk", enc_bm, prepped["wae"]))
    if hidden is None:
        h0s = jnp.tanh(enc_bm[:, 0, H:] @ prepped["ws"].T + prepped["bs"])             # [B, H]
    else:
        h0s = hidden[0].astype(jnp.float32)
    h0 = jnp.zeros((Bp, LANE), jnp.float32).at[:B, :H].set(h0s)
    # Embedding gather for all T steps (dropout = identity, eval mode), padded to 128 lanes.
    emb = jnp.zeros((T, Bp, LANE), jnp.bfloat16).at[:, :B, :E].set(prepped["emb_table"][tokens])

    # ---- fused decode: grid over steps, weights resident, hidden carried in VMEM ----
    in_specs = [
        pl.BlockSpec((1, Bp, LANE), lambda t: (t, 0, 0)),       # emb (per step)
        pl.BlockSpec((Bp, S, LANE), lambda t: (0, 0, 0)),       # enc (resident)
        pl.BlockSpec((Bp, S, LANE), lambda t: (0, 0, 0)),       # e_enc (resident)
        pl.BlockSpec((1, LANE), lambda t: (0, 0)),              # vw
        pl.BlockSpec((Bp, LANE), lambda t: (0, 0)),             # h0
        pl.BlockSpec((LANE, 4 * LANE), lambda t: (0, 0)),       # w_hid
        pl.BlockSpec((1, 4 * LANE), lambda t: (0, 0)),          # b_hid
        pl.BlockSpec((2 * LANE, 5 * LANE), lambda t: (0, 0)),   # w_ec
        pl.BlockSpec((1, 5 * LANE), lambda t: (0, 0)),          # b_ec
        pl.BlockSpec((LANE, 2 * LANE), lambda t: (0, 0)),       # wm_h
        pl.BlockSpec((LANE, Vp), lambda t: (0, 0)),             # wo
        pl.BlockSpec((1, Vp), lambda t: (0, 0)),                # bo
    ]
    out_specs = (
        pl.BlockSpec((1, Bp, Vp), lambda t: (t, 0, 0)),         # per-step prediction (lane-dense)
        pl.BlockSpec((Bp, LANE), lambda t: (0, 0)),             # final hidden (resident)
    )

    pred_pad, hid_pad = pl.pallas_call(
        decoder_kernel,
        grid=(T,),
        in_specs=in_specs,
        out_specs=out_specs,
        out_shape=(
            jax.ShapeDtypeStruct((T, Bp, Vp), jnp.float32),
            jax.ShapeDtypeStruct((Bp, LANE), jnp.float32),
        ),
        scratch_shapes=[pltpu.VMEM((Bp, LANE), jnp.float32)],
        compiler_params=pltpu.CompilerParams(dimension_semantics=("arbitrary",)),
    )(emb, enc, e_enc, prepped["vw"], h0,
      prepped["w_hid"], prepped["b_hid"], prepped["w_ec"], prepped["b_ec"],
      prepped["wm_h"], prepped["wo"], prepped["bo"])

    predictions = pred_pad[:, :B, :V]
    next_hidden = hid_pad[:B, :H][None, :, :]
    return predictions, next_hidden


decoder_decode = jax.jit(_decoder_decode)


def decoder_forward(prepped, encoder_outputs, input_tokens, hidden=None):
    """Single decode step, matching Decoder.forward(encoder_outputs, input, hidden)."""
    preds, next_hidden = decoder_decode(prepped, encoder_outputs, input_tokens[None], hidden)
    return preds[0], next_hidden


# ---------------------------------------------------------------------------
# Pure-JAX f32 reference (mirrors the PyTorch module exactly, eval-mode dropout).
# ---------------------------------------------------------------------------
def decoder_ref_step(raw, encoder_outputs, tokens, hidden):
    H = raw["W_s_w"].shape[0]
    if hidden is None:
        hidden = jnp.tanh(encoder_outputs[0, :, H:] @ raw["W_s_w"].T + raw["W_s_b"])[None]
    emb = raw["embedding"][tokens]                                      # [B, E]
    S = encoder_outputs.shape[0]
    trg = jnp.broadcast_to(hidden, (S,) + hidden.shape[1:])             # [S, B, H]
    cat = jnp.concatenate([trg, encoder_outputs], axis=-1)              # [S, B, 3H]
    e = jnp.tanh(cat @ raw["attn_w"].T + raw["attn_b"])
    e = (e @ raw["v_w"].T + raw["v_b"])[..., 0]                         # [S, B]
    a = jax.nn.softmax(e.T, axis=1)                                     # [B, S]
    context = jnp.einsum("bs,sbh->bh", a, encoder_outputs)              # [B, 2H]
    x = jnp.concatenate([emb, context], axis=-1)
    h = hidden[0]
    gi = x @ raw["gru_w_ih"].T + raw["gru_b_ih"]
    gh = h @ raw["gru_w_hh"].T + raw["gru_b_hh"]
    i_r, i_z, i_n = jnp.split(gi, 3, axis=-1)
    h_r, h_z, h_n = jnp.split(gh, 3, axis=-1)
    r = jax.nn.sigmoid(i_r + h_r)
    z = jax.nn.sigmoid(i_z + h_z)
    n = jnp.tanh(i_n + r * h_n)
    h_new = (1.0 - z) * n + z * h
    mi = jnp.concatenate([emb, h_new, context], axis=-1)
    mo = mi @ raw["maxout_w"].T + raw["maxout_b"]
    D = mo.shape[-1] // 2
    m = jnp.max(mo.reshape(mo.shape[0], D, 2), axis=-1)
    pred = m @ raw["fc_out_w"].T + raw["fc_out_b"]
    return pred, h_new[None]


if __name__ == "__main__":
    # Small shapes consistent with the module.
    output_dim, embed_dim, hidden_size, deep_dim = 64, 16, 32, 32
    S, B, T = 8, 2, 4

    key = jax.random.PRNGKey(0)
    k_enc, k_tok, k_par = jax.random.split(key, 3)

    encoder_outputs = jax.random.normal(k_enc, (S, B, 2 * hidden_size), dtype=jnp.float32)
    tokens = jax.random.randint(k_tok, (T, B), 0, output_dim, dtype=jnp.int32)

    raw = init_raw_params(k_par, output_dim, embed_dim, hidden_size, deep_dim)
    prepped = prepare_params(raw)               # one-time weight fusion/padding/bf16 cast

    # Fused multi-step decode: one pallas_call, grid over T steps.
    preds, next_hidden = decoder_decode(prepped, encoder_outputs, tokens)
    jax.block_until_ready((preds, next_hidden))
    assert preds.shape == (T, B, output_dim)
    assert next_hidden.shape == (1, B, hidden_size)

    # Single-step call matching Decoder.forward(encoder_outputs, input, hidden=None).
    pred0, hid0 = decoder_forward(prepped, encoder_outputs, tokens[0])
    jax.block_until_ready((pred0, hid0))
    assert pred0.shape == (B, output_dim) and hid0.shape == (1, B, hidden_size)

    # Pure-JAX f32 reference (kernel uses bf16 weights/activations -> loose tolerance).
    ref_preds, h = [], None
    for t in range(T):
        p, h = decoder_ref_step(raw, encoder_outputs, tokens[t], h)
        ref_preds.append(p)
    ref_preds = jnp.stack(ref_preds)
    err_p = float(jnp.max(jnp.abs(preds - ref_preds)))
    err_h = float(jnp.max(jnp.abs(next_hidden - h)))
    assert err_p < 0.1 and err_h < 0.1, (err_p, err_h)
    assert bool(jnp.all(jnp.isfinite(preds))) and bool(jnp.all(jnp.isfinite(next_hidden)))
    print("KERNEL_OK")
</pallas_src>

<mosaic_0001>
module attributes {stable_mosaic.version = 11 : i64} {
  func.func @decoder_kernel(%arg0: i32, %arg1: memref<1x8x128xbf16, #tpu.memory_space<vmem>>, %arg2: memref<8x8x128xbf16, #tpu.memory_space<vmem>>, %arg3: memref<8x8x128xf32, #tpu.memory_space<vmem>>, %arg4: memref<1x128xf32, #tpu.memory_space<vmem>>, %arg5: memref<8x128xf32, #tpu.memory_space<vmem>>, %arg6: memref<128x512xbf16, #tpu.memory_space<vmem>>, %arg7: memref<1x512xf32, #tpu.memory_space<vmem>>, %arg8: memref<256x640xbf16, #tpu.memory_space<vmem>>, %arg9: memref<1x640xf32, #tpu.memory_space<vmem>>, %arg10: memref<128x256xbf16, #tpu.memory_space<vmem>>, %arg11: memref<128x128xbf16, #tpu.memory_space<vmem>>, %arg12: memref<1x128xf32, #tpu.memory_space<vmem>>, %arg13: memref<1x8x128xf32, #tpu.memory_space<vmem>>, %arg14: memref<8x128xf32, #tpu.memory_space<vmem>>, %arg15: memref<8x128xf32, #tpu.memory_space<vmem>>) attributes {dimension_semantics = [#tpu.dimension_semantics<arbitrary>], iteration_bounds = array<i64: 4>, scalar_prefetch = 0 : i64, scratch_operands = 1 : i64, tpu.core_type = #tpu.core_type<tc>, window_params = [{transform_indices = @transform_0, window_bounds = array<i64: 1, 8, 128>}, {pipeline_mode = #tpu.pipeline_mode<synchronous>, transform_indices = @transform_1, window_bounds = array<i64: 8, 8, 128>}, {pipeline_mode = #tpu.pipeline_mode<synchronous>, transform_indices = @transform_2, window_bounds = array<i64: 8, 8, 128>}, {pipeline_mode = #tpu.pipeline_mode<synchronous>, transform_indices = @transform_3, window_bounds = array<i64: 1, 128>}, {pipeline_mode = #tpu.pipeline_mode<synchronous>, transform_indices = @transform_4, window_bounds = array<i64: 8, 128>}, {pipeline_mode = #tpu.pipeline_mode<synchronous>, transform_indices = @transform_5, window_bounds = array<i64: 128, 512>}, {pipeline_mode = #tpu.pipeline_mode<synchronous>, transform_indices = @transform_6, window_bounds = array<i64: 1, 512>}, {pipeline_mode = #tpu.pipeline_mode<synchronous>, transform_indices = @transform_7, window_bounds = array<i64: 256, 640>}, {pipeline_mode = #tpu.pipeline_mode<synchronous>, transform_indices = @transform_8, window_bounds = array<i64: 1, 640>}, {pipeline_mode = #tpu.pipeline_mode<synchronous>, transform_indices = @transform_9, window_bounds = array<i64: 128, 256>}, {pipeline_mode = #tpu.pipeline_mode<synchronous>, transform_indices = @transform_10, window_bounds = array<i64: 128, 128>}, {pipeline_mode = #tpu.pipeline_mode<synchronous>, transform_indices = @transform_11, window_bounds = array<i64: 1, 128>}, {transform_indices = @transform_12, window_bounds = array<i64: 1, 8, 128>}, {pipeline_mode = #tpu.pipeline_mode<synchronous>, transform_indices = @transform_13, window_bounds = array<i64: 8, 128>}]} {
    %c0_i32 = arith.constant 0 : i32
    %0 = arith.cmpi eq, %arg0, %c0_i32 : i32
    %1 = arith.extui %0 : i1 to i32
    %c0_i32_0 = arith.constant 0 : i32
    %2 = arith.cmpi ne, %1, %c0_i32_0 : i32
    scf.if %2 {
      %c0_44 = arith.constant 0 : index
      %c0_45 = arith.constant 0 : index
      %91 = vector.load %arg5[%c0_44, %c0_45] : memref<8x128xf32, #tpu.memory_space<vmem>>, vector<8x128xf32>
      %c0_46 = arith.constant 0 : index
      %c0_47 = arith.constant 0 : index
      %92 = vector.load %arg15[%c0_46, %c0_47] : memref<8x128xf32, #tpu.memory_space<vmem>>, vector<8x128xf32>
      tpu.vector_store %arg15[%c0_46, %c0_47], %91 {strides = array<i32>} : memref<8x128xf32, #tpu.memory_space<vmem>>, vector<8x128xf32>,
    } else {
    }
    %c0 = arith.constant 0 : index
    %c0_1 = arith.constant 0 : index
    %3 = vector.load %arg15[%c0, %c0_1] : memref<8x128xf32, #tpu.memory_space<vmem>>, vector<8x128xf32>
    %4 = arith.truncf %3 : vector<8x128xf32> to vector<8x128xbf16>
    %c0_2 = arith.constant 0 : index
    %c0_3 = arith.constant 0 : index
    %5 = vector.load %arg6[%c0_2, %c0_3] : memref<128x512xbf16, #tpu.memory_space<vmem>>, vector<128x512xbf16>
    %cst = arith.constant dense<0.000000e+00> : vector<8x512xf32>
    %6 = tpu.matmul %4, %5, %cst {dimension_numbers = #tpu.dot_dimension_numbers<[1], [0], [0], [1], [0, 0, 1, 1], [], []>} : vector<8x128xbf16>, vector<128x512xbf16>, vector<8x512xf32> -> vector<8x512xf32>
    %c0_4 = arith.constant 0 : index
    %c0_5 = arith.constant 0 : index
    %7 = vector.load %arg7[%c0_4, %c0_5] : memref<1x512xf32, #tpu.memory_space<vmem>>, vector<1x512xf32>
    %8 = vector.broadcast %7 : vector<1x512xf32> to vector<8x512xf32>
    %9 = arith.addf %6, %8 : vector<8x512xf32>
    %10 = vector.extract_strided_slice %9 {offsets = [0, 0], sizes = [8, 128], strides = [1, 1]} : vector<8x512xf32> to vector<8x128xf32>
    %11 = vector.extract_strided_slice %9 {offsets = [0, 128], sizes = [8, 128], strides = [1, 1]} : vector<8x512xf32> to vector<8x128xf32>
    %12 = vector.extract_strided_slice %9 {offsets = [0, 256], sizes = [8, 128], strides = [1, 1]} : vector<8x512xf32> to vector<8x128xf32>
    %13 = vector.extract_strided_slice %9 {offsets = [0, 384], sizes = [8, 128], strides = [1, 1]} : vector<8x512xf32> to vector<8x128xf32>
    %c0_6 = arith.constant 0 : index
    %c0_7 = arith.constant 0 : index
    %c0_8 = arith.constant 0 : index
    %14 = vector.load %arg3[%c0_6, %c0_7, %c0_8] : memref<8x8x128xf32, #tpu.memory_space<vmem>>, vector<8x8x128xf32>
    %15 = vector.shape_cast %10 : vector<8x128xf32> to vector<8x1x128xf32>
    %16 = vector.broadcast %15 : vector<8x1x128xf32> to vector<8x8x128xf32>
    %17 = arith.addf %14, %16 : vector<8x8x128xf32>
    %18 = math.tanh %17 : vector<8x8x128xf32>
    %c0_9 = arith.constant 0 : index
    %c0_10 = arith.constant 0 : index
    %19 = vector.load %arg4[%c0_9, %c0_10] : memref<1x128xf32, #tpu.memory_space<vmem>>, vector<1x128xf32>
    %20 = vector.shape_cast %19 : vector<1x128xf32> to vector<1x1x128xf32>
    %21 = vector.broadcast %20 : vector<1x1x128xf32> to vector<8x8x128xf32>
    %22 = arith.mulf %18, %21 : vector<8x8x128xf32>
    %cst_11 = arith.constant dense<0.000000e+00> : vector<8x8xf32>
    %23 = vector.multi_reduction <add>, %22, %cst_11 [2] : vector<8x8x128xf32> to vector<8x8xf32>
    %cst_12 = arith.constant dense<0xFF800000> : vector<8xf32>
    %24 = vector.multi_reduction <maximumf>, %23, %cst_12 [1] : vector<8x8xf32> to vector<8xf32>
    %25 = vector.shape_cast %24 : vector<8xf32> to vector<8x1xf32>
    %26 = vector.broadcast %25 : vector<8x1xf32> to vector<8x8xf32>
    %27 = arith.subf %23, %26 : vector<8x8xf32>
    %28 = math.exp %27 : vector<8x8xf32>
    %cst_13 = arith.constant dense<0.000000e+00> : vector<8xf32>
    %29 = vector.multi_reduction <add>, %28, %cst_13 [1] : vector<8x8xf32> to vector<8xf32>
    %30 = vector.shape_cast %29 : vector<8xf32> to vector<8x1xf32>
    %31 = tpu.reciprocal %30 {approx = true} : vector<8x1xf32> -> vector<8x1xf32>
    %32 = vector.broadcast %31 : vector<8x1xf32> to vector<8x8xf32>
    %33 = arith.mulf %28, %32 : vector<8x8xf32>
    %34 = vector.shape_cast %33 : vector<8x8xf32> to vector<8x8x1xf32>
    %c0_14 = arith.constant 0 : index
    %c0_15 = arith.constant 0 : index
    %c0_16 = arith.constant 0 : index
    %35 = vector.load %arg2[%c0_14, %c0_15, %c0_16] : memref<8x8x128xbf16, #tpu.memory_space<vmem>>, vector<8x8x128xbf16>
    %36 = arith.extf %35 : vector<8x8x128xbf16> to vector<8x8x128xf32>
    %37 = vector.broadcast %34 : vector<8x8x1xf32> to vector<8x8x128xf32>
    %38 = arith.mulf %37, %36 : vector<8x8x128xf32>
    %cst_17 = arith.constant dense<0.000000e+00> : vector<8x128xf32>
    %39 = vector.multi_reduction <add>, %38, %cst_17 [1] : vector<8x8x128xf32> to vector<8x128xf32>
    %c0_18 = arith.constant 0 : index
    %c0_19 = arith.constant 0 : index
    %c0_20 = arith.constant 0 : index
    %40 = vector.load %arg1[%c0_18, %c0_19, %c0_20] : memref<1x8x128xbf16, #tpu.memory_space<vmem>>, vector<1x8x128xbf16>
    %41 = vector.shape_cast %40 : vector<1x8x128xbf16> to vector<8x128xbf16>
    %42 = arith.truncf %39 : vector<8x128xf32> to vector<8x128xbf16>
    %43 = tpu.concatenate %41, %42 in 1 : vector<8x128xbf16>, vector<8x128xbf16> -> vector<8x256xbf16>
    %c0_21 = arith.constant 0 : index
    %c0_22 = arith.constant 0 : index
    %44 = vector.load %arg8[%c0_21, %c0_22] : memref<256x640xbf16, #tpu.memory_space<vmem>>, vector<256x640xbf16>
    %cst_23 = arith.constant dense<0.000000e+00> : vector<8x640xf32>
    %45 = tpu.matmul %43, %44, %cst_23 {dimension_numbers = #tpu.dot_dimension_numbers<[1], [0], [0], [1], [0, 0, 1, 1], [], []>} : vector<8x256xbf16>, vector<256x640xbf16>, vector<8x640xf32> -> vector<8x640xf32>
    %c0_24 = arith.constant 0 : index
    %c0_25 = arith.constant 0 : index
    %46 = vector.load %arg9[%c0_24, %c0_25] : memref<1x640xf32, #tpu.memory_space<vmem>>, vector<1x640xf32>
    %47 = vector.broadcast %46 : vector<1x640xf32> to vector<8x640xf32>
    %48 = arith.addf %45, %47 : vector<8x640xf32>
    %49 = vector.extract_strided_slice %48 {offsets = [0, 0], sizes = [8, 128], strides = [1, 1]} : vector<8x640xf32> to vector<8x128xf32>
    %50 = arith.addf %49, %11 : vector<8x128xf32>
    %51 = arith.negf %50 : vector<8x128xf32>
    %52 = math.exp %51 : vector<8x128xf32>
    %cst_26 = arith.constant 1.000000e+00 : f32
    %53 = vector.broadcast %cst_26 : f32 to vector<8x128xf32>
    %54 = arith.addf %53, %52 : vector<8x128xf32>
    %55 = arith.divf %53, %54 : vector<8x128xf32>
    %56 = vector.extract_strided_slice %48 {offsets = [0, 128], sizes = [8, 128], strides = [1, 1]} : vector<8x640xf32> to vector<8x128xf32>
    %57 = arith.addf %56, %12 : vector<8x128xf32>
    %58 = arith.negf %57 : vector<8x128xf32>
    %59 = math.exp %58 : vector<8x128xf32>
    %cst_27 = arith.constant 1.000000e+00 : f32
    %60 = vector.broadcast %cst_27 : f32 to vector<8x128xf32>
    %61 = arith.addf %60, %59 : vector<8x128xf32>
    %62 = arith.divf %60, %61 : vector<8x128xf32>
    %63 = vector.extract_strided_slice %48 {offsets = [0, 256], sizes = [8, 128], strides = [1, 1]} : vector<8x640xf32> to vector<8x128xf32>
    %64 = arith.mulf %55, %13 : vector<8x128xf32>
    %65 = arith.addf %63, %64 : vector<8x128xf32>
    %66 = math.tanh %65 : vector<8x128xf32>
    %cst_28 = arith.constant 1.000000e+00 : f32
    %67 = vector.broadcast %cst_28 : f32 to vector<8x128xf32>
    %68 = arith.subf %67, %62 : vector<8x128xf32>
    %69 = arith.mulf %68, %66 : vector<8x128xf32>
    %70 = arith.mulf %62, %3 : vector<8x128xf32>
    %71 = arith.addf %69, %70 : vector<8x128xf32>
    %72 = vector.extract_strided_slice %48 {offsets = [0, 384], sizes = [8, 256], strides = [1, 1]} : vector<8x640xf32> to vector<8x256xf32>
    %73 = arith.truncf %71 : vector<8x128xf32> to vector<8x128xbf16>
    %c0_29 = arith.constant 0 : index
    %c0_30 = arith.constant 0 : index
    %74 = vector.load %arg10[%c0_29, %c0_30] : memref<128x256xbf16, #tpu.memory_space<vmem>>, vector<128x256xbf16>
    %cst_31 = arith.constant dense<0.000000e+00> : vector<8x256xf32>
    %75 = tpu.matmul %73, %74, %cst_31 {dimension_numbers = #tpu.dot_dimension_numbers<[1], [0], [0], [1], [0, 0, 1, 1], [], []>} : vector<8x128xbf16>, vector<128x256xbf16>, vector<8x256xf32> -> vector<8x256xf32>
    %76 = arith.addf %72, %75 : vector<8x256xf32>
    %77 = vector.extract_strided_slice %76 {offsets = [0, 0], sizes = [8, 128], strides = [1, 1]} : vector<8x256xf32> to vector<8x128xf32>
    %78 = vector.extract_strided_slice %76 {offsets = [0, 128], sizes = [8, 128], strides = [1, 1]} : vector<8x256xf32> to vector<8x128xf32>
    %79 = arith.maximumf %77, %78 : vector<8x128xf32>
    %80 = arith.truncf %79 : vector<8x128xf32> to vector<8x128xbf16>
    %c0_32 = arith.constant 0 : index
    %c0_33 = arith.constant 0 : index
    %81 = vector.load %arg11[%c0_32, %c0_33] : memref<128x128xbf16, #tpu.memory_space<vmem>>, vector<128x128xbf16>
    %cst_34 = arith.constant dense<0.000000e+00> : vector<8x128xf32>
    %82 = tpu.matmul %80, %81, %cst_34 {dimension_numbers = #tpu.dot_dimension_numbers<[1], [0], [0], [1], [0, 0, 1, 1], [], []>} : vector<8x128xbf16>, vector<128x128xbf16>, vector<8x128xf32> -> vector<8x128xf32>
    %c0_35 = arith.constant 0 : index
    %c0_36 = arith.constant 0 : index
    %83 = vector.load %arg12[%c0_35, %c0_36] : memref<1x128xf32, #tpu.memory_space<vmem>>, vector<1x128xf32>
    %84 = vector.broadcast %83 : vector<1x128xf32> to vector<8x128xf32>
    %85 = arith.addf %82, %84 : vector<8x128xf32>
    %c0_37 = arith.constant 0 : index
    %c0_38 = arith.constant 0 : index
    %c0_39 = arith.constant 0 : index
    %86 = vector.load %arg13[%c0_37, %c0_38, %c0_39] : memref<1x8x128xf32, #tpu.memory_space<vmem>>, vector<1x8x128xf32>
    %87 = vector.shape_cast %86 : vector<1x8x128xf32> to vector<8x128xf32>
    %88 = vector.shape_cast %85 : vector<8x128xf32> to vector<1x8x128xf32>
    tpu.vector_store %arg13[%c0_37, %c0_38, %c0_39], %88 {strides = array<i32>} : memref<1x8x128xf32, #tpu.memory_space<vmem>>, vector<1x8x128xf32>,
    %c0_40 = arith.constant 0 : index
    %c0_41 = arith.constant 0 : index
    %89 = vector.load %arg15[%c0_40, %c0_41] : memref<8x128xf32, #tpu.memory_space<vmem>>, vector<8x128xf32>
    tpu.vector_store %arg15[%c0_40, %c0_41], %71 {strides = array<i32>} : memref<8x128xf32, #tpu.memory_space<vmem>>, vector<8x128xf32>,
    %c0_42 = arith.constant 0 : index
    %c0_43 = arith.constant 0 : index
    %90 = vector.load %arg14[%c0_42, %c0_43] : memref<8x128xf32, #tpu.memory_space<vmem>>, vector<8x128xf32>
    tpu.vector_store %arg14[%c0_42, %c0_43], %71 {strides = array<i32>} : memref<8x128xf32, #tpu.memory_space<vmem>>, vector<8x128xf32>,
    return
  }
  func.func @transform_0(%arg0: i32) -> (i32, i32, i32) {
    %c0_i32 = arith.constant 0 : i32
    %c0_i32_0 = arith.constant 0 : i32
    %c0_i32_1 = arith.constant 0 : i32
    return %arg0, %c0_i32, %c0_i32_0 : i32, i32, i32
  }
  func.func @transform_1(%arg0: i32) -> (i32, i32, i32) {
    %c0_i32 = arith.constant 0 : i32
    %c0_i32_0 = arith.constant 0 : i32
    %c0_i32_1 = arith.constant 0 : i32
    %c0_i32_2 = arith.constant 0 : i32
    return %c0_i32, %c0_i32_0, %c0_i32_1 : i32, i32, i32
  }
  func.func @transform_2(%arg0: i32) -> (i32, i32, i32) {
    %c0_i32 = arith.constant 0 : i32
    %c0_i32_0 = arith.constant 0 : i32
    %c0_i32_1 = arith.constant 0 : i32
    %c0_i32_2 = arith.constant 0 : i32
    return %c0_i32, %c0_i32_0, %c0_i32_1 : i32, i32, i32
  }
  func.func @transform_3(%arg0: i32) -> (i32, i32) {
    %c0_i32 = arith.constant 0 : i32
    %c0_i32_0 = arith.constant 0 : i32
    %c0_i32_1 = arith.constant 0 : i32
    return %c0_i32, %c0_i32_0 : i32, i32
  }
  func.func @transform_4(%arg0: i32) -> (i32, i32) {
    %c0_i32 = arith.constant 0 : i32
    %c0_i32_0 = arith.constant 0 : i32
    %c0_i32_1 = arith.constant 0 : i32
    return %c0_i32, %c0_i32_0 : i32, i32
  }
  func.func @transform_5(%arg0: i32) -> (i32, i32) {
    %c0_i32 = arith.constant 0 : i32
    %c0_i32_0 = arith.constant 0 : i32
    %c0_i32_1 = arith.constant 0 : i32
    return %c0_i32, %c0_i32_0 : i32, i32
  }
  func.func @transform_6(%arg0: i32) -> (i32, i32) {
    %c0_i32 = arith.constant 0 : i32
    %c0_i32_0 = arith.constant 0 : i32
    %c0_i32_1 = arith.constant 0 : i32
    return %c0_i32, %c0_i32_0 : i32, i32
  }
  func.func @transform_7(%arg0: i32) -> (i32, i32) {
    %c0_i32 = arith.constant 0 : i32
    %c0_i32_0 = arith.constant 0 : i32
    %c0_i32_1 = arith.constant 0 : i32
    return %c0_i32, %c0_i32_0 : i32, i32
  }
  func.func @transform_8(%arg0: i32) -> (i32, i32) {
    %c0_i32 = arith.constant 0 : i32
    %c0_i32_0 = arith.constant 0 : i32
    %c0_i32_1 = arith.constant 0 : i32
    return %c0_i32, %c0_i32_0 : i32, i32
  }
  func.func @transform_9(%arg0: i32) -> (i32, i32) {
    %c0_i32 = arith.constant 0 : i32
    %c0_i32_0 = arith.constant 0 : i32
    %c0_i32_1 = arith.constant 0 : i32
    return %c0_i32, %c0_i32_0 : i32, i32
  }
  func.func @transform_10(%arg0: i32) -> (i32, i32) {
    %c0_i32 = arith.constant 0 : i32
    %c0_i32_0 = arith.constant 0 : i32
    %c0_i32_1 = arith.constant 0 : i32
    return %c0_i32, %c0_i32_0 : i32, i32
  }
  func.func @transform_11(%arg0: i32) -> (i32, i32) {
    %c0_i32 = arith.constant 0 : i32
    %c0_i32_0 = arith.constant 0 : i32
    %c0_i32_1 = arith.constant 0 : i32
    return %c0_i32, %c0_i32_0 : i32, i32
  }
  func.func @transform_12(%arg0: i32) -> (i32, i32, i32) {
    %c0_i32 = arith.constant 0 : i32
    %c0_i32_0 = arith.constant 0 : i32
    %c0_i32_1 = arith.constant 0 : i32
    return %arg0, %c0_i32, %c0_i32_0 : i32, i32, i32
  }
  func.func @transform_13(%arg0: i32) -> (i32, i32) {
    %c0_i32 = arith.constant 0 : i32
    %c0_i32_0 = arith.constant 0 : i32
    %c0_i32_1 = arith.constant 0 : i32
    return %c0_i32, %c0_i32_0 : i32, i32
  }
}

</mosaic_0001>

<bundles_post_ra>
// kernel: _decoder_decode.1
= control target key start
LH: loop header
LB: loop body
LE: loop exit
PB: predicated region body
PF: predicated region fallthrough
CT: control target
= control target key end

     0   :  { %19 = vsyncpa [#allocation4], 0  ;;  %s3426_s0 = inlined_call_operand.vmem [shape: bf16[4,8,128], index: 0, kind: input, shape index: {}]   ;;  %s3427_s1 = inlined_call_operand.vmem [shape: bf16[8,8,128], index: 1, kind: input, shape index: {}]   ;;  %s3428_s2 = inlined_call_operand.vmem [shape: f32[8,8,128], index: 2, kind: input, shape index: {}]   ;;  %s3429_s3 = inlined_call_operand.vmem [shape: f32[1,128], index: 3, kind: input, shape index: {}]   ;;  %s3430_s4 = inlined_call_operand.vmem [shape: f32[8,128], index: 4, kind: input, shape index: {}]   ;;  %s3431_s5 = inlined_call_operand.vmem [shape: bf16[128,512], index: 5, kind: input, shape index: {}]   ;;  %s3432_s6 = inlined_call_operand.vmem [shape: f32[1,512], index: 6, kind: input, shape index: {}]   ;;  %s3433_s7 = inlined_call_operand.hbm [shape: bf16[256,640], index: 7, kind: input, shape index: {}]   ;;  %s3434_s8 = inlined_call_operand.vmem [shape: f32[1,640], index: 8, kind: input, shape index: {}]   ;;  %s3435_s9 = inlined_call_operand.vmem [shape: bf16[128,256], index: 9, kind: input, shape index: {}]   ;;  %s3436_s10 = inlined_call_operand.hbm [shape: bf16[128,128], index: 10, kind: input, shape index: {}]   ;;  %s3437_s11 = inlined_call_operand.vmem [shape: f32[1,128], index: 11, kind: input, shape index: {}]   ;;  %s3438_s12 = inlined_call_operand.vmem [shape: f32[4,8,128], index: 12, kind: output, shape index: {0}]   ;;  %s3439_s13 = inlined_call_operand.vmem [shape: f32[8,128], index: 13, kind: output, shape index: {1}]  }
   0x1   :  { %20 = vsyncpa [#allocation6], 0  ;;  %s2979_s25 = smov 0  }
   0x2 LB: > { %s2899_s26 = smov [#allocation3]   ;;  %s2985_s28 = sadd.s32 4294967295, %s2897_s25   ;;  %s2897_s25 = sphi %s2979_s25, %s26_s25  }
   0x3   : > { %s365_s27 = sshll.u32 %s2899_s26, 4  ;;  %p2332_p0 = scmp.ge.s32.totalorder %s2897_s25, 1  ;;  %s366_s27 = int_to_ptr.vmem [resolvable:$true] %s365_s27 }
   0x4   : > { %p335_p1 = scmp.lt.s32.totalorder %s2897_s25, 5  ;;  %p2569_p4 = scmp.eq.s32.totalorder %s2985_s28, 0 }
   0x5   : > { %s2900_s30 = smov [#allocation5]   ;;  %s2842_s16 = scalar_lea.vmem %s366_s27, 10240 }
   0x6   : > { %p2990_p3 = pnand %p2332_p0, %p335_p1  ;;  %s384_s14 = sshll.u32 %s2900_s30, 4  ;;  %s385_s14 = int_to_ptr.vmem [resolvable:$true] %s384_s14 }
   0x7   : > { %p2843_p8 = scmp.ne.s32.totalorder %s366_s27, %s2842_s16  ;;  %p2850_p11 = scmp.lt.s32.totalorder %s366_s27, %s366_s27 }
   0x8   : > { %p2562_p5 = pneg %p2990_p3  ;;  %p2851_p12 = scmp.lt.s32.totalorder %s2842_s16, %s2842_s16 }
   0xa   : > { %p2999_p6 = pnand %p2569_p4, %p2562_p5  ;;  %p2852_p13 = por %p2851_p12, %p2850_p11 }
   0xc   : > { %p2833_p7 = pneg %p2999_p6 }
   0xe   : > { %p2845_p9 = pnand %p2843_p8, %p2833_p7 }
  0x10   : > { %p2846_p10 = pneg %p2845_p9 }
  0x12   : > { %p2853_p0 = pnand %p2852_p13, %p2846_p10 }
  0x14   : > { %2856 = shalt.err (!%p2853_p0)
}
  0x15   : > { %s2901_s17 = smov 320   ;;  %s2902_s18 = smov 20  }
  0x16   : > { %2565 = dma.hbm_to_vmem [thread:$0]  (!%p2999_p6), %s3433_s7, 10240, %s366_s27, [#allocation4], %s2901_s17, %s2901_s17, %s2902_s18  }
  0x17   : > { %s2868_s21 = scalar_lea.vmem %s385_s14, 1024  ;;  %p2876_p9 = scmp.lt.s32.totalorder %s385_s14, %s385_s14 }
  0x18   : > { %p2869_p1 = scmp.ne.s32.totalorder %s385_s14, %s2868_s21  ;;  %p2877_p2 = scmp.lt.s32.totalorder %s2868_s21, %s2868_s21 }
  0x1a   : > { %p2871_p5 = pnand %p2869_p1, %p2833_p7  ;;  %p2878_p11 = por %p2877_p2, %p2876_p9 }
  0x1c   : > { %p2872_p8 = pneg %p2871_p5 }
  0x1e   : > { %p2879_p10 = pnand %p2878_p11, %p2872_p8 }
  0x20   : > { %2882 = shalt.err (!%p2879_p10)
}
  0x21   : > { %s2903_s22 = smov 64   ;;  %s2904_s23 = smov 4  }
  0x22   : > { %2568 = dma.hbm_to_vmem [thread:$0]  (!%p2999_p6), %s3436_s10, 1024, %s385_s14, [#allocation6], %s2903_s22, %s2903_s22, %s2904_s23  }
  0x23   : > { %410 = sbr.rel (%p2990_p3) target bundleno = 1756 (0x6dc), region = 68 }
  0x28   : > { %2888 = dma.done.wait (%p2569_p4), [#allocation4], 10240  }
  0x29   : > { %2890 = vsyncadd (%p2569_p4), [#allocation4], 4294957056 }
  0x2a   : > { %2892 = dma.done.wait (%p2569_p4), [#allocation6], 1024  }
  0x2b   : > { %2894 = vsyncadd (%p2569_p4), [#allocation6], 4294966272  ;;  %p456_p2 = scmp.lt.s32.totalorder %s2985_s28, 3  ;;  %p3442_p3 = scmp.ne.s32.totalorder %s2985_s28, 0 }
  0x2d   : > { %s457_s27 = scalar_select %p456_p2, %s2985_s28, 3 }
  0x2e   : > { %468 = sbr.rel (%p3442_p3) target bundleno = 53 (0x35), region = 80 }
  0x2f   : > { %s2339_s30 = sshll.u32 %s457_s27, 2  ;;  %s2340_s14 = sshll.u32 %s457_s27, 3 }
  0x30   : > { %s3036_s16 = scalar_lea.vmem %s3426_s0, %s2339_s30  ;;  %s3041_s19 = scalar_lea.vmem %s3438_s12, %s2340_s14 }
  0x33   : > { %v469_v0 = vld [vmem:[%s3430_s4] sm:$0xff] }
  0x34   : > { %470 = vst [vmem:[#allocation2] sm:$0xff] %v469_v0 }
  0x35 PF: > { %v2593_v1 = vld [vmem:[%s3431_s5 + $0xe4] ss:$16 sps:$4 sm:$0xff]   ;;  %v2595_v2 = vld [vmem:[%s3431_s5 + $0xe0] ss:$16 sps:$4 sm:$0xff]   ;;  %v2905_v3 = vmov 0   ;;  %v507_v20 = vlaneseq  ;;  %v770_v45 = vld [vmem:[%s3428_s2 + $0x8] sm:$0xff] }
  0x36   : > { %719 = vmatprep.mubr.bf16.mxu0 %v2905_v3  ;;  %2592 = vset.pattern.permute.xlu0 %v2905_v3  ;;  %v2596_v4 = vld [vmem:[%s3431_s5 + $0xc4] ss:$16 sps:$4 sm:$0xff]   ;;  %v2598_v5 = vld [vmem:[%s3431_s5 + $0xc0] ss:$16 sps:$4 sm:$0xff]   ;;  %v2906_v22 = vmov 1966171168  }
  0x37   : > { %687 = vmatprep.subr.bf16.mxu0 %v2593_v1  ;;  %2591 = vset.pattern.permute.xlu1 %v2905_v3  ;;  %v2599_v6 = vld [vmem:[%s3431_s5 + $0xa4] ss:$16 sps:$4 sm:$0xff]   ;;  %v2601_v7 = vld [vmem:[%s3431_s5 + $0xa0] ss:$16 sps:$4 sm:$0xff]   ;;  %v3104_v21 = vshrl.u32 %v507_v20, 7  ;;  %v780_v23 = vunpack.c.l.s4 %v2906_v22  ;;  %v772_v50 = vld [vmem:[%s3428_s2 + $0x18] sm:$0xff] }
  0x38   : > { %688 = vmatpush1.bf16.msra.mxu0 %v2595_v2  ;;  %760 = vmatprep.mubr.bf16.mxu1 %v2905_v3  ;;  %v2602_v8 = vld [vmem:[%s3431_s5 + $0x84] ss:$16 sps:$4 sm:$0xff]   ;;  %v2604_v9 = vld [vmem:[%s3431_s5 + $0x80] ss:$16 sps:$4 sm:$0xff]   ;;  %v774_v62 = vld [vmem:[%s3428_s2 + $0x28] sm:$0xff]  ;;  %vm956_vm0 = vcmask 1041409  }
  0x39   : > { %689 = vmatprep.subr.bf16.mxu0 %v2596_v4  ;;  %v2605_v10 = vld [vmem:[%s3431_s5 + $0x64] ss:$16 sps:$4 sm:$0xff]   ;;  %v2607_v11 = vld [vmem:[%s3431_s5 + $0x60] ss:$16 sps:$4 sm:$0xff]   ;;  %v3107_v24 = vsub.s32 0, %v3104_v21  ;;  %v781_v26 = vunpack.c.0.s8 %v780_v23  ;;  %vm958_vm1 = vcmask 1042434  }
  0x3a   : > { %v2608_v12 = vld [vmem:[%s3431_s5 + $0x44] ss:$16 sps:$4 sm:$0xff]   ;;  %v2610_v13 = vld [vmem:[%s3431_s5 + $0x40] ss:$16 sps:$4 sm:$0xff]   ;;  %vm960_vm2 = vcmask 1043459   ;;  %vm962_vm3 = vcmask 1044484  }
  0x3b   : > { %v2611_v14 = vld [vmem:[%s3431_s5 + $0x24] ss:$16 sps:$4 sm:$0xff]   ;;  %v2613_v15 = vld [vmem:[%s3431_s5 + $0x20] ss:$16 sps:$4 sm:$0xff]   ;;  %v784_v28 = vsub.s32 %v781_v26, %v3104_v21  ;;  %vm964_vm4 = vcmask 1045509   ;;  %vm966_vm5 = vcmask 1046534  }
  0x3c   : > { %690 = vmatpush1.bf16.msra.mxu0 %v2598_v5  ;;  %v2614_v16 = vld [vmem:[%s3431_s5 + $0x4] ss:$16 sps:$4 sm:$0xff]   ;;  %v2616_v17 = vld [vmem:[%s3431_s5] ss:$16 sps:$4 sm:$0xff]   ;;  %v776_v5 = vld [vmem:[%s3428_s2 + $0x38] sm:$0xff]  ;;  %vm968_vm6 = vcmask 1047559  }
  0x3d   : > { %691 = vmatprep.subr.bf16.mxu0 %v2599_v6  ;;  %v471_v18 = vld [vmem:[#allocation2] sm:$0xff]  ;;  %v771_v46 = vld [vmem:[%s3428_s2 + $0x10] sm:$0xff]  ;;  %vm971_vm7 = vcmask 64512   ;;  %vm2908_vm8 = vmmov 0  }
  0x3e   : > { %v3100_v19 = vpack.c.bf16 %v471_v18, %v471_v18  ;;  %v505_v25 = vld [vmem:[%s3432_s6] sm:$0xf]  ;;  %v775_v1 = vld [vmem:[%s3428_s2 + $0x30] sm:$0xff] }
  0x3f   : > { %v510_v27 = vrot.slane %v505_v25, %v3107_v24  ;;  %v769_v39 = vld [vmem:[%s3428_s2] sm:$0xff] }
  0x40   : > { %692 = vmatpush1.bf16.msra.mxu0 %v2601_v7  ;;  %v773_v55 = vld [vmem:[%s3428_s2 + $0x20] sm:$0xff] }
  0x41   : > { %693 = vmatprep.subr.bf16.mxu0 %v2602_v8  ;;  %v2374_v8 = vld [vmem:[%s3429_s3] ss:$0 sm:$0xff] }
  0x44   : > { %694 = vmatpush1.bf16.msra.mxu0 %v2604_v9 }
  0x45   : > { %695 = vmatprep.subr.bf16.mxu0 %v2605_v10 }
  0x48   : > { %696 = vmatpush1.bf16.msra.mxu0 %v2607_v11 }
  0x49   : > { %697 = vmatprep.subr.bf16.mxu0 %v2608_v12 }
  0x4c   : > { %698 = vmatpush1.bf16.msra.mxu0 %v2610_v13 }
  0x4d   : > { %699 = vmatprep.subr.bf16.mxu0 %v2611_v14 }
  0x50   : > { %700 = vmatpush1.bf16.msra.mxu0 %v2613_v15 }
  0x51   : > { %701 = vmatprep.subr.bf16.mxu0 %v2614_v16 }
  0x54   : > { %702 = vmatpush1.bf16.msra.mxu0 %v2616_v17 }
  0x57   : > { %720 = vmatmul.mubr.bf16.vlgmr.msra.gmra.mxu0 %v3100_v19 }
 0x117   : > { %v721_v29 = vpop.f32.mrf.mxu0 }
 0x118   : > { %v722_v30 = vadd.f32 %v721_v29, %v510_v27  ;;  %v923_v29 = vand.u32 127, %v507_v20 }
 0x119   : > { %v3114_v31 = vpop.f32.mrf.mxu0 }
 0x11a   : > { %v778_v32 = vcombine.high %v722_v30, %v722_v30  ;;  %v785_v33 = vrot.slane %v722_v30, %v784_v28 }
 0x11b   : > { %v725_v34 = vpop.f32.mrf.mxu0 }
 0x11c   : > { %v792_v35 = vrot.slane %v778_v32, %v784_v28  ;;  %v793_v36 = vcombine.high %v785_v33, %v785_v33  ;;  %v801_v37 = vrot.slane %v785_v33, %v784_v28  ;;  %v3153_v32 = vsub.s32 %v923_v29, %v3104_v21 }
 0x11d   : > { %v726_v38 = vpop.f32.mrf.mxu0 }
 0x11e   : > { %v794_v40 = vcombine.high %v792_v35, %v792_v35  ;;  %v808_v41 = vrot.slane %v792_v35, %v784_v28  ;;  %v815_v42 = vrot.slane %v793_v36, %v784_v28  ;;  %v823_v43 = vcombine.high %v801_v37, %v801_v37 }
 0x11f   : > { %v830_v44 = vrot.slane %v801_v37, %v3107_v24 }
 0x120   : > { %v822_v47 = vrot.slane %v794_v40, %v784_v28  ;;  %v825_v48 = vcombine.high %v815_v42, %v815_v42  ;;  %v834_v49 = vrot.slane %v815_v42, %v3107_v24  ;;  %v824_v51 = vcombine.high %v808_v41, %v808_v41 }
 0x121   : > { %v838_v52 = vrot.slane %v823_v43, %v3107_v24  ;;  %v846_v53 = vrot.slane %v808_v41, %v3107_v24  ;;  %v867_v54 = vadd.f32 %v830_v44, %v769_v39 }
 0x122   : > { %v842_v56 = vrot.slane %v825_v48, %v3107_v24  ;;  %v868_v57 = vadd.f32 %v834_v49, %v770_v45  ;;  %v826_v59 = vcombine.high %v822_v47, %v822_v47  ;;  %v850_v60 = vrot.slane %v822_v47, %v3107_v24 }
 0x123   : > { %v869_v58 = vadd.f32 %v838_v52, %v771_v46  ;;  %2785 = vtanh.f32 %v867_v54  ;;  %v854_v63 = vrot.slane %v824_v51, %v3107_v24  ;;  %v871_v0 = vadd.f32 %v846_v53, %v773_v55 }
 0x124   : > { %v870_v61 = vadd.f32 %v842_v56, %v772_v50  ;;  %2787 = vtanh.f32 %v868_v57  ;;  %v858_v2 = vrot.slane %v826_v59, %v3107_v24  ;;  %v872_v4 = vadd.f32 %v850_v60, %v774_v62 }
 0x125   : > { %2789 = vtanh.f32 %v869_v58  ;;  %v873_v6 = vadd.f32 %v854_v63, %v775_v1  ;;  %v3172_v55 = vsub.s32 2, %v3104_v21  ;;  %v3175_v56 = vsub.s32 1, %v3104_v21 }
 0x126   : > { %2791 = vtanh.f32 %v870_v61  ;;  %v874_v7 = vadd.f32 %v858_v2, %v776_v5  ;;  %v3178_v57 = vsub.s32 3, %v3104_v21  ;;  %v3184_v62 = vsub.s32 4, %v3104_v21 }
 0x127   : > { %2793 = vtanh.f32 %v871_v0 }
 0x128   : > { %2795 = vtanh.f32 %v872_v4 }
 0x129   : > { %2797 = vtanh.f32 %v873_v6  ;;  %v998_v6 = vsub.s32 5, %v3104_v21 }
 0x12a   : > { %2799 = vtanh.f32 %v874_v7 }
 0x130   : > { %v2786_v9 = vpop.eup %2785 }
 0x131   : > { %v890_v10 = vmul.f32 %v2786_v9, %v2374_v8  ;;  %v2788_v11 = vpop.eup %2787 }
 0x132   : > { %v2790_v12 = vpop.eup %2789  ;;  %v891_v15 = vmul.f32 %v2788_v11, %v2374_v8 }
 0x133   : > { %898 = vadd.xlane.f32.xlu0 %v890_v10  ;;  %v892_v13 = vmul.f32 %v2790_v12, %v2374_v8  ;;  %v2792_v14 = vpop.eup %2791  ;;  %v1002_v10 = vsub.s32 6, %v3104_v21 }
 0x134   : > { %v2794_v16 = vpop.eup %2793  ;;  %v893_v17 = vmul.f32 %v2792_v14, %v2374_v8  ;;  %v1006_v14 = vsub.s32 7, %v3104_v21  ;;  %v2685_v21 = vld [vmem:[#allocation3 + $0xac] ss:$20 sps:$4 sm:$0xff]  }
 0x135   : > { %902 = vadd.xlane.f32.xlu1 %v892_v13  ;;  %v2796_v18 = vpop.eup %2795  ;;  %v894_v22 = vmul.f32 %v2794_v16, %v2374_v8 }
 0x136   : > { %v2798_v23 = vpop.eup %2797  ;;  %v895_v25 = vmul.f32 %v2796_v18, %v2374_v8 }
 0x137   : > { %900 = vadd.xlane.f32.xlu0 %v891_v15  ;;  %v2800_v26 = vpop.eup %2799  ;;  %v896_v27 = vmul.f32 %v2798_v23, %v2374_v8 }
 0x138   : > { %v897_v28 = vmul.f32 %v2800_v26, %v2374_v8 }
 0x139   : > { %904 = vadd.xlane.f32.xlu1 %v893_v17 }
 0x13b   : > { %906 = vadd.xlane.f32.xlu0 %v894_v22 }
 0x13d   : > { %908 = vadd.xlane.f32.xlu1 %v895_v25 }
 0x13f   : > { %910 = vadd.xlane.f32.xlu0 %v896_v27 }
 0x141   : > { %912 = vadd.xlane.f32.xlu1 %v897_v28 }
 0x1bc   : > { %v899_v30 = vpop.xlane.xlu0 %898 }
 0x1bd   : > { %v927_v35 = vrot.slane %v899_v30, %v3153_v32 }
 0x1be   : > { %v903_v33 = vpop.xlane.xlu1 %902 }
 0x1bf   : > { %v935_v37 = vrot.slane %v903_v33, %v3153_v32 }
 0x1c0   : > { %v901_v34 = vpop.xlane.xlu0 %900 }
 0x1c1   : > { %v931_v36 = vrot.slane %v901_v34, %v3153_v32 }
 0x1c2   : > { %v905_v39 = vpop.xlane.xlu1 %904 }
 0x1c3   : > { %v957_v38 = vsel %vm956_vm0, %v931_v36, %v927_v35  ;;  %v939_v40 = vrot.slane %v905_v39, %v3153_v32 }
 0x1c4   : > { %v959_v20 = vsel %vm958_vm1, %v935_v37, %v957_v38  ;;  %v907_v41 = vpop.xlane.xlu0 %906 }
 0x1c5   : > { %v943_v42 = vrot.slane %v907_v41, %v3153_v32  ;;  %v961_v43 = vsel %vm960_vm2, %v939_v40, %v959_v20 }
 0x1c6   : > { %v909_v45 = vpop.xlane.xlu1 %908 }
 0x1c7   : > { %v963_v44 = vsel %vm962_vm3, %v943_v42, %v961_v43  ;;  %v947_v46 = vrot.slane %v909_v45, %v3153_v32 }
 0x1c8   : > { %v911_v47 = vpop.xlane.xlu0 %910 }
 0x1c9   : > { %v951_v48 = vrot.slane %v911_v47, %v3153_v32  ;;  %v965_v49 = vsel %vm964_vm4, %v947_v46, %v963_v44 }
 0x1ca   : > { %v913_v50 = vpop.xlane.xlu1 %912 }
 0x1cb   : > { %v967_v51 = vsel %vm966_vm5, %v951_v48, %v965_v49  ;;  %v955_v52 = vrot.slane %v913_v50, %v3153_v32 }
 0x1cd   : > { %v969_v53 = vsel %vm968_vm6, %v955_v52, %v967_v51 }
 0x1ce   : > { %v972_v54 = vsel %vm971_vm7, %v969_v53, -inf }
 0x1cf   : > { %973 = vmax.xlane.f32.xlu0 %v972_v54 }
 0x258   : > { %v974_v58 = vpop.xlane.xlu0 %973 }
 0x259   : > { %v979_v59 = vrot.slane %v974_v58, %v3107_v24  ;;  %v983_v60 = vrot.slane %v974_v58, %v3175_v56  ;;  %v987_v61 = vrot.slane %v974_v58, %v3172_v55  ;;  %v991_v63 = vrot.slane %v974_v58, %v3178_v57 }
 0x25a   : > { %v995_v7 = vrot.slane %v974_v58, %v3184_v62  ;;  %v999_v11 = vrot.slane %v974_v58, %v998_v6  ;;  %v1003_v15 = vrot.slane %v974_v58, %v1002_v10  ;;  %v1007_v18 = vrot.slane %v974_v58, %v1006_v14 }
 0x25b   : > { %v1016_v0 = vsub.f32 %v899_v30, %v979_v59  ;;  %v1017_v1 = vsub.f32 %v901_v34, %v983_v60  ;;  %v1018_v2 = vsub.f32 %v903_v33, %v987_v61  ;;  %v1019_v8 = vsub.f32 %v905_v39, %v991_v63 }
 0x25c   : > { %v1020_v12 = vsub.f32 %v907_v41, %v995_v7  ;;  %v1021_v16 = vsub.f32 %v909_v45, %v999_v11  ;;  %v1022_v22 = vsub.f32 %v911_v47, %v1003_v15  ;;  %v1023_v27 = vsub.f32 %v913_v50, %v1007_v18  ;;  %v2628_v7 = vld [vmem:[#allocation3 + $0xf4] ss:$20 sps:$4 sm:$0xff]   ;;  %v2637_v18 = vld [vmem:[%s3431_s5 + $0x88] ss:$16 sps:$4 sm:$0xff]  }
 0x25d   : > { %v1024_v4 = vmul.f32 1.442695, %v1016_v0  ;;  %v1026_v5 = vmul.f32 1.442695, %v1017_v1  ;;  %v1028_v9 = vmul.f32 1.442695, %v1018_v2 }
 0x25e   : > { %v1030_v13 = vmul.f32 1.442695, %v1019_v8  ;;  %v1032_v17 = vmul.f32 1.442695, %v1020_v12  ;;  %v1034_v23 = vmul.f32 1.442695, %v1021_v16 }
 0x25f   : > { %2801 = vpow2.f32 %v1024_v4  ;;  %v1036_v28 = vmul.f32 1.442695, %v1022_v22  ;;  %v1038_v30 = vmul.f32 1.442695, %v1023_v27  ;;  %v2617_v1 = vld [vmem:[%s3431_s5 + $0xec] ss:$16 sps:$4 sm:$0xff]  }
 0x260   : > { %2803 = vpow2.f32 %v1026_v5  ;;  %v2619_v2 = vld [vmem:[%s3431_s5 + $0xe8] ss:$16 sps:$4 sm:$0xff]   ;;  %v2620_v4 = vld [vmem:[#allocation3 + $0x118] ss:$20 sps:$4 sm:$0xff]   ;;  %728 = vmatprep.subr.bf16.mxu1 %v2617_v1  ;;  %v2629_v11 = vld [vmem:[%s3431_s5 + $0xac] ss:$16 sps:$4 sm:$0xff]  }
 0x261   : > { %2805 = vpow2.f32 %v1028_v9  ;;  %v2622_v5 = vld [vmem:[#allocation3 + $0x11c] ss:$20 sps:$4 sm:$0xff]   ;;  %729 = vmatpush1.bf16.msra.mxu1 %v2619_v2  ;;  %v2634_v12 = vld [vmem:[#allocation3 + $0xcc] ss:$20 sps:$4 sm:$0xff]   ;;  %v2635_v16 = vld [vmem:[%s3431_s5 + $0x8c] ss:$16 sps:$4 sm:$0xff]  }
 0x262   : > { %2807 = vpow2.f32 %v1030_v13  ;;  %1850 = vmatprep.subr.bf16.mxu0 %v2622_v5  ;;  %v2625_v8 = vld [vmem:[%s3431_s5 + $0xc8] ss:$16 sps:$4 sm:$0xff]   ;;  %v2632_v15 = vld [vmem:[#allocation3 + $0xc8] ss:$20 sps:$4 sm:$0xff]   ;;  %v2668_v1 = vld [vmem:[#allocation3 + $0x258] ss:$20 sps:$4 sm:$0xff]  }
 0x263   : > { %2809 = vpow2.f32 %v1032_v17  ;;  %1851 = vmatpush1.bf16.msra.mxu0 %v2620_v4  ;;  %v2626_v9 = vld [vmem:[#allocation3 + $0xf0] ss:$20 sps:$4 sm:$0xff]   ;;  %v2638_v22 = vld [vmem:[#allocation3 + $0xa0] ss:$20 sps:$4 sm:$0xff]  }
 0x264   : > { %2811 = vpow2.f32 %v1034_v23  ;;  %1852 = vmatprep.subr.bf16.mxu0 %v2628_v7  ;;  %v2631_v13 = vld [vmem:[%s3431_s5 + $0xa8] ss:$16 sps:$4 sm:$0xff]   ;;  %v2640_v17 = vld [vmem:[#allocation3 + $0xa4] ss:$20 sps:$4 sm:$0xff]  }
 0x265   : > { %2813 = vpow2.f32 %v1036_v28  ;;  %v2673_v2 = vld [vmem:[#allocation3 + $0xfc] ss:$20 sps:$4 sm:$0xff]  }
 0x266   : > { %2815 = vpow2.f32 %v1038_v30 }
 0x267   : > { %1853 = vmatpush1.bf16.msra.mxu0 %v2626_v9  ;;  %v2682_v9 = vld [vmem:[#allocation3 + $0x20c] ss:$20 sps:$4 sm:$0xff]  }
 0x268   : > { %1854 = vmatprep.subr.bf16.mxu0 %v2634_v12  ;;  %v2686_v12 = vld [vmem:[#allocation3 + $0x1e0] ss:$20 sps:$4 sm:$0xff]  }
 0x26b   : > { %1855 = vmatpush1.bf16.msra.mxu0 %v2632_v15  ;;  %v2689_v15 = vld [vmem:[#allocation3 + $0x80] ss:$20 sps:$4 sm:$0xff]  }
 0x26c   : > { %v3197_v25 = vpop.eup %2801  ;;  %1856 = vmatprep.subr.bf16.mxu0 %v2640_v17  ;;  %v2697_v17 = vld [vmem:[#allocation3 + $0x5c] ss:$20 sps:$4 sm:$0xff]  }
 0x26d   : > { %v3199_v26 = vpop.eup %2803  ;;  %1049 = vperm.xlu1 %2591, %v3197_v25  }
 0x26e   : > { %1052 = vperm.xlu0 %2592, %v3199_v26   ;;  %v3203_v29 = vpop.eup %2805 }
 0x26f   : > { %v3206_v33 = vpop.eup %2807  ;;  %1857 = vmatpush1.bf16.msra.mxu0 %v2638_v22  ;;  %v2700_v22 = vld [vmem:[#allocation3 + $0x194] ss:$20 sps:$4 sm:$0xff]  }
 0x270   : > { %v3209_v34 = vpop.eup %2809 }
 0x271   : > { %1055 = vperm.xlu1 %2591, %v3203_v29   ;;  %v3212_v35 = vpop.eup %2811 }
 0x272   : > { %v3215_v36 = vpop.eup %2813 }
 0x273   : > { %v3218_v37 = vpop.eup %2815 }
 0x275   : > { %1058 = vperm.xlu1 %2591, %v3206_v33  }
 0x279   : > { %1061 = vperm.xlu1 %2591, %v3209_v34  }
 0x27d   : > { %1064 = vperm.xlu1 %2591, %v3212_v35  }
 0x281   : > { %1067 = vperm.xlu1 %2591, %v3215_v36  }
 0x285   : > { %1070 = vperm.xlu1 %2591, %v3218_v37  }
 0x2e8   : > { %v1050_v38 = vpop.permute.xlu1 %1049 }
 0x2e9   : > { %v1053_v41 = vpop.permute.xlu0 %1052  ;;  %v1075_v44 = vrot.slane %v1050_v38, %v3153_v32 }
 0x2ea   : > { %v1079_v43 = vrot.slane %v1053_v41, %v3153_v32  ;;  %v2643_v41 = vld [vmem:[%s3431_s5 + $0x68] ss:$16 sps:$4 sm:$0xff]  }
 0x2ec   : > { %v1056_v39 = vpop.permute.xlu1 %1055  ;;  %v1104_v49 = vsel %vm956_vm0, %v1079_v43, %v1075_v44  ;;  %v2647_v43 = vld [vmem:[%s3431_s5 + $0x4c] ss:$16 sps:$4 sm:$0xff]  }
 0x2ed   : > { %v1083_v45 = vrot.slane %v1056_v39, %v3153_v32  ;;  %v2641_v39 = vld [vmem:[%s3431_s5 + $0x6c] ss:$16 sps:$4 sm:$0xff]  }
 0x2ef   : > { %v1105_v51 = vsel %vm958_vm1, %v1083_v45, %v1104_v49  ;;  %v2649_v45 = vld [vmem:[%s3431_s5 + $0x48] ss:$16 sps:$4 sm:$0xff]  }
 0x2f0   : > { %v1059_v20 = vpop.permute.xlu1 %1058 }
 0x2f1   : > { %v1087_v46 = vrot.slane %v1059_v20, %v3153_v32 }
 0x2f3   : > { %v1106_v53 = vsel %vm960_vm2, %v1087_v46, %v1105_v51  ;;  %v2652_v46 = vld [vmem:[#allocation3 + $0x54] ss:$20 sps:$4 sm:$0xff]   ;;  %v2658_v51 = vld [vmem:[#allocation3 + $0x2c] ss:$20 sps:$4 sm:$0xff]  }
 0x2f4   : > { %v1062_v40 = vpop.permute.xlu1 %1061 }
 0x2f5   : > { %v1091_v47 = vrot.slane %v1062_v40, %v3153_v32 }
 0x2f7   : > { %v1107_v54 = vsel %vm962_vm3, %v1091_v47, %v1106_v53  ;;  %v2650_v47 = vld [vmem:[#allocation3 + $0x50] ss:$20 sps:$4 sm:$0xff]  }
 0x2f8   : > { %v1065_v42 = vpop.permute.xlu1 %1064  ;;  %v2659_v53 = vld [vmem:[%s3431_s5 + $0xc] ss:$16 sps:$4 sm:$0xff]  }
 0x2f9   : > { %v1095_v50 = vrot.slane %v1065_v42, %v3153_v32  ;;  %v2646_v42 = vld [vmem:[#allocation3 + $0x7c] ss:$20 sps:$4 sm:$0xff]  }
 0x2fa   : > { %1858 = vmatprep.subr.bf16.mxu0 %v2646_v42  ;;  %v2710_v42 = vld [vmem:[#allocation3 + $0x140] ss:$20 sps:$4 sm:$0xff]  }
 0x2fb   : > { %v1108_v59 = vsel %vm964_vm4, %v1095_v50, %v1107_v54  ;;  %v2655_v50 = vld [vmem:[%s3431_s5 + $0x28] ss:$16 sps:$4 sm:$0xff]  }
 0x2fc   : > { %v1068_v48 = vpop.permute.xlu1 %1067 }
 0x2fd   : > { %v1099_v52 = vrot.slane %v1068_v48, %v3153_v32  ;;  %v2653_v48 = vld [vmem:[%s3431_s5 + $0x2c] ss:$16 sps:$4 sm:$0xff]  }
 0x2ff   : > { %v1109_v61 = vsel %vm966_vm5, %v1099_v52, %v1108_v59  ;;  %v2656_v52 = vld [vmem:[#allocation3 + $0x28] ss:$20 sps:$4 sm:$0xff]   ;;  %v2664_v59 = vld [vmem:[#allocation3 + $0x4] ss:$20 sps:$4 sm:$0xff]  }
 0x300   : > { %v1071_v58 = vpop.permute.xlu1 %1070 }
 0x301   : > { %v1103_v60 = vrot.slane %v1071_v58, %v3153_v32  ;;  %v2623_v32 = vld [vmem:[%s3431_s5 + $0xcc] ss:$16 sps:$4 sm:$0xff]   ;;  %v2661_v58 = vld [vmem:[%s3431_s5 + $0x8] ss:$16 sps:$4 sm:$0xff]  }
 0x302   : > { %730 = vmatprep.subr.bf16.mxu1 %v2623_v32  ;;  %v2674_v32 = vld [vmem:[#allocation3 + $0x230] ss:$20 sps:$4 sm:$0xff]  }
 0x303   : > { %v1110_v63 = vsel %vm968_vm6, %v1103_v60, %v1109_v61  ;;  %731 = vmatpush1.bf16.msra.mxu1 %v2625_v8  ;;  %v2662_v60 = vld [vmem:[#allocation3] ss:$20 sps:$4 sm:$0xff]   ;;  %v2667_v61 = vld [vmem:[#allocation3 + $0x124] ss:$20 sps:$4 sm:$0xff]  }
 0x304   : > { %v1112_v0 = vsel %vm971_vm7, %v1110_v63, 0.0  ;;  %732 = vmatprep.subr.bf16.mxu1 %v2629_v11  ;;  %v2677_v8 = vld [vmem:[#allocation3 + $0xd0] ss:$20 sps:$4 sm:$0xff]  }
 0x305   : > { %1113 = vadd.xlane.f32.xlu1 %v1112_v0  ;;  %v2665_v0 = vld [vmem:[#allocation3 + $0x120] ss:$20 sps:$4 sm:$0xff]   ;;  %v2688_v11 = vld [vmem:[#allocation3 + $0x1e4] ss:$20 sps:$4 sm:$0xff]  }
 0x307   : > { %733 = vmatpush1.bf16.msra.mxu1 %v2631_v13  ;;  %v2691_v13 = vld [vmem:[#allocation3 + $0x84] ss:$20 sps:$4 sm:$0xff]  }
 0x308   : > { %734 = vmatprep.subr.bf16.mxu1 %v2635_v16  ;;  %v2692_v16 = vld [vmem:[#allocation3 + $0x1b8] ss:$20 sps:$4 sm:$0xff]  }
 0x30b   : > { %735 = vmatpush1.bf16.msra.mxu1 %v2637_v18  ;;  %v2695_v18 = vld [vmem:[#allocation3 + $0x58] ss:$20 sps:$4 sm:$0xff]  }
 0x30c   : > { %736 = vmatprep.subr.bf16.mxu1 %v2641_v39  ;;  %v2709_v39 = vld [vmem:[#allocation3 + $0xc] ss:$20 sps:$4 sm:$0xff]  }
 0x30f   : > { %737 = vmatpush1.bf16.msra.mxu1 %v2643_v41  ;;  %v2715_v41 = vld [vmem:[#allocation3 + $0x264] ss:$20 sps:$4 sm:$0xff]  }
 0x310   : > { %738 = vmatprep.subr.bf16.mxu1 %v2647_v43  ;;  %v2718_v43 = vld [vmem:[#allocation3 + $0x23c] ss:$20 sps:$4 sm:$0xff]  }
 0x313   : > { %739 = vmatpush1.bf16.msra.mxu1 %v2649_v45  ;;  %v2719_v45 = vld [vmem:[#allocation3 + $0x210] ss:$20 sps:$4 sm:$0xff]  }
 0x314   : > { %740 = vmatprep.subr.bf16.mxu1 %v2653_v48  ;;  %v2727_v48 = vld [vmem:[#allocation3 + $0x1c4] ss:$20 sps:$4 sm:$0xff]  }
 0x317   : > { %741 = vmatpush1.bf16.msra.mxu1 %v2655_v50  ;;  %v2728_v50 = vld [vmem:[#allocation3 + $0x198] ss:$20 sps:$4 sm:$0xff]  }
 0x318   : > { %742 = vmatprep.subr.bf16.mxu1 %v2659_v53  ;;  %v2736_v53 = vld [vmem:[#allocation3 + $0x14c] ss:$20 sps:$4 sm:$0xff]  }
 0x31b   : > { %743 = vmatpush1.bf16.msra.mxu1 %v2661_v58 }
 0x31c   : > { %1891 = vmatprep.subr.bf16.mxu1 %v2667_v61  ;;  %v2500_v61 = vld [vmem:[%s3427_s1 + $0x8] sm:$0xff]  }
 0x31e   : > { %761 = vmatmul.mubr.bf16.vlgmr.msra.gmra.mxu1 %v3100_v19  ;;  %v2679_v19 = vld [vmem:[#allocation3 + $0xd4] ss:$20 sps:$4 sm:$0xff]  }
 0x31f   : > { %1892 = vmatpush1.bf16.msra.mxu1 %v2665_v0  ;;  %v2490_v0 = vunpack.c.l.bf16 %v2500_v61 }
 0x320   : > { %1893 = vmatprep.subr.bf16.mxu1 %v2673_v2 }
 0x38e   : > { %v1114_v23 = vpop.xlane.xlu1 %1113 }
 0x38f   : > { %2817 = vrcp.f32 %v1114_v23  ;;  %v2698_v23 = vld [vmem:[#allocation3 + $0x190] ss:$20 sps:$4 sm:$0xff]  }
 0x39c   : > { %v2818_v27 = vpop.eup %2817 }
 0x39d   : > { %v1120_v28 = vrot.slane %v2818_v27, %v3107_v24  ;;  %v1124_v38 = vrot.slane %v2818_v27, %v3175_v56  ;;  %v1128_v40 = vrot.slane %v2818_v27, %v3172_v55  ;;  %v1148_v5 = vrot.slane %v2818_v27, %v1006_v14  ;;  %v2683_v14 = vld [vmem:[#allocation3 + $0xa8] ss:$20 sps:$4 sm:$0xff]  }
 0x39f   : > { %v1157_v30 = vmul.f32 %v3197_v25, %v1120_v28  ;;  %v1158_v20 = vmul.f32 %v3199_v26, %v1124_v38  ;;  %v2644_v25 = vld [vmem:[#allocation3 + $0x78] ss:$20 sps:$4 sm:$0xff]   ;;  %v1159_v44 = vmul.f32 %v3203_v29, %v1128_v40  ;;  %v1132_v26 = vrot.slane %v2818_v27, %v3178_v57  ;;  %v2703_v28 = vld [vmem:[#allocation3 + $0x34] ss:$20 sps:$4 sm:$0xff]  }
 0x3a0   : > { %1859 = vmatpush1.bf16.msra.mxu0 %v2644_v25  ;;  %v1136_v29 = vrot.slane %v2818_v27, %v3184_v62  ;;  %v1164_v7 = vmul.f32 %v3218_v37, %v1148_v5  ;;  %v2694_v37 = vld [vmem:[#allocation3 + $0x1bc] ss:$20 sps:$4 sm:$0xff]   ;;  %v2713_v25 = vld [vmem:[#allocation3 + $0x260] ss:$20 sps:$4 sm:$0xff]   ;;  %v2491_v5 = vunpack.c.h.bf16 %v2500_v61 }
 0x3a1   : > { %1183 = vperm.xlu0 %2592, %v1157_v30   ;;  %1860 = vmatprep.subr.bf16.mxu0 %v2652_v46  ;;  %v1160_v49 = vmul.f32 %v3206_v33, %v1132_v26  ;;  %v1140_v33 = vrot.slane %v2818_v27, %v998_v6  ;;  %v2670_v6 = vld [vmem:[#allocation3 + $0x25c] ss:$20 sps:$4 sm:$0xff]   ;;  %v2706_v30 = vld [vmem:[#allocation3 + $0x16c] ss:$20 sps:$4 sm:$0xff]   ;;  %v2721_v26 = vld [vmem:[#allocation3 + $0x214] ss:$20 sps:$4 sm:$0xff]  }
 0x3a2   : > { %v1161_v54 = vmul.f32 %v3209_v34, %v1136_v29  ;;  %v1144_v34 = vrot.slane %v2818_v27, %v1002_v10  ;;  %v2676_v10 = vld [vmem:[#allocation3 + $0x234] ss:$20 sps:$4 sm:$0xff]   ;;  %v2701_v27 = vld [vmem:[#allocation3 + $0x30] ss:$20 sps:$4 sm:$0xff]   ;;  %v2724_v46 = vld [vmem:[#allocation3 + $0x1ec] ss:$20 sps:$4 sm:$0xff]  }
 0x3a3   : > { %v1162_v63 = vmul.f32 %v3212_v35, %v1140_v33  ;;  %v2671_v35 = vld [vmem:[#allocation3 + $0xf8] ss:$20 sps:$4 sm:$0xff]   ;;  %v2704_v38 = vld [vmem:[#allocation3 + $0x168] ss:$20 sps:$4 sm:$0xff]  }
 0x3a4   : > { %1861 = vmatpush1.bf16.msra.mxu0 %v2650_v47  ;;  %v1163_v4 = vmul.f32 %v3215_v36, %v1144_v34  ;;  %1894 = vmatpush1.bf16.msra.mxu1 %v2671_v35  ;;  %v2680_v36 = vld [vmem:[#allocation3 + $0x208] ss:$20 sps:$4 sm:$0xff]  }
 0x3a5   : > { %1188 = vperm.xlu0 %2592, %v1158_v20   ;;  %1862 = vmatprep.subr.bf16.mxu0 %v2658_v51  ;;  %v2712_v20 = vld [vmem:[#allocation3 + $0x144] ss:$20 sps:$4 sm:$0xff]   ;;  %v2707_v40 = vld [vmem:[#allocation3 + $0x8] ss:$20 sps:$4 sm:$0xff]  }
 0x3a6   : > { %1895 = vmatprep.subr.bf16.mxu1 %v2679_v19  ;;  %v2722_v47 = vld [vmem:[#allocation3 + $0x1e8] ss:$20 sps:$4 sm:$0xff]  }
 0x3a7   : > { %v2730_v29 = vld [vmem:[#allocation3 + $0x19c] ss:$20 sps:$4 sm:$0xff]   ;;  %v2733_v51 = vld [vmem:[#allocation3 + $0x174] ss:$20 sps:$4 sm:$0xff]  }
 0x3a8   : > { %1863 = vmatpush1.bf16.msra.mxu0 %v2656_v52  ;;  %1896 = vmatpush1.bf16.msra.mxu1 %v2677_v8  ;;  %v2731_v52 = vld [vmem:[#allocation3 + $0x170] ss:$20 sps:$4 sm:$0xff]   ;;  %v2485_v33 = vld [vmem:[%s3427_s1] sm:$0xff]  }
 0x3a9   : > { %1193 = vperm.xlu0 %2592, %v1159_v44   ;;  %1864 = vmatprep.subr.bf16.mxu0 %v2664_v59  ;;  %v2716_v44 = vld [vmem:[#allocation3 + $0x238] ss:$20 sps:$4 sm:$0xff]   ;;  %v2487_v59 = vunpack.c.h.bf16 %v2485_v33 }
 0x3aa   : > { %1897 = vmatprep.subr.bf16.mxu1 %v2685_v21 }
 0x3ac   : > { %1865 = vmatpush1.bf16.msra.mxu0 %v2662_v60  ;;  %1898 = vmatpush1.bf16.msra.mxu1 %v2683_v14  ;;  %v2486_v60 = vunpack.c.l.bf16 %v2485_v33 }
 0x3ad   : > { %1198 = vperm.xlu0 %2592, %v1160_v49   ;;  %1866 = vmatprep.subr.bf16.mxu0 %v2670_v6  ;;  %v2725_v49 = vld [vmem:[#allocation3 + $0x1c0] ss:$20 sps:$4 sm:$0xff]  }
 0x3ae   : > { %1899 = vmatprep.subr.bf16.mxu1 %v2691_v13 }
 0x3b0   : > { %1867 = vmatpush2.bf16.msra.mxu0 %v2668_v1  ;;  %1900 = vmatpush1.bf16.msra.mxu1 %v2689_v15 }
 0x3b1   : > { %1203 = vperm.xlu0 %2592, %v1161_v54   ;;  %1868 = vmatprep.subr.bf16.mxu0 %v2676_v10  ;;  %v2734_v54 = vld [vmem:[#allocation3 + $0x148] ss:$20 sps:$4 sm:$0xff]  }
 0x3b2   : > { %1901 = vmatprep.subr.bf16.mxu1 %v2697_v17 }
 0x3b4   : > { %1869 = vmatpush2.bf16.msra.mxu0 %v2674_v32  ;;  %1902 = vmatpush1.bf16.msra.mxu1 %v2695_v18  ;;  %v2501_v32 = vld [vmem:[%s3427_s1 + $0x10] sm:$0xff]   ;;  %v2502_v18 = vld [vmem:[%s3427_s1 + $0x18] sm:$0xff]  }
 0x3b5   : > { %1208 = vperm.xlu0 %2592, %v1162_v63   ;;  %1870 = vmatprep.subr.bf16.mxu0 %v2682_v9  ;;  %v2494_v21 = vunpack.c.l.bf16 %v2501_v32  ;;  %v2495_v15 = vunpack.c.h.bf16 %v2501_v32 }
 0x3b6   : > { %1903 = vmatprep.subr.bf16.mxu1 %v2703_v28 }
 0x3b8   : > { %1871 = vmatpush2.bf16.msra.mxu0 %v2680_v36  ;;  %1904 = vmatpush1.bf16.msra.mxu1 %v2701_v27 }
 0x3b9   : > { %1213 = vperm.xlu0 %2592, %v1163_v4   ;;  %1872 = vmatprep.subr.bf16.mxu0 %v2688_v11 }
 0x3ba   : > { %1905 = vmatprep.subr.bf16.mxu1 %v2709_v39 }
 0x3bc   : > { %1873 = vmatpush2.bf16.msra.mxu0 %v2686_v12  ;;  %1906 = vmatpush1.bf16.msra.mxu1 %v2707_v40 }
 0x3bd   : > { %1218 = vperm.xlu0 %2592, %v1164_v7   ;;  %1874 = vmatprep.subr.bf16.mxu0 %v2694_v37 }
 0x3be   : > { %1907 = vmatprep.subr.bf16.mxu1 %v2715_v41 }
 0x3c0   : > { %1875 = vmatpush2.bf16.msra.mxu0 %v2692_v16  ;;  %1908 = vmatpush2.bf16.msra.mxu1 %v2713_v25 }
 0x3c1   : > { %1876 = vmatprep.subr.bf16.mxu0 %v2700_v22  ;;  %1909 = vmatprep.subr.bf16.mxu1 %v2718_v43 }
 0x3c4   : > { %1877 = vmatpush2.bf16.msra.mxu0 %v2698_v23  ;;  %1910 = vmatpush2.bf16.msra.mxu1 %v2716_v44 }
 0x3c5   : > { %1878 = vmatprep.subr.bf16.mxu0 %v2706_v30  ;;  %1911 = vmatprep.subr.bf16.mxu1 %v2721_v26 }
 0x3c8   : > { %1879 = vmatpush2.bf16.msra.mxu0 %v2704_v38  ;;  %1912 = vmatpush2.bf16.msra.mxu1 %v2719_v45  ;;  %v2498_v38 = vunpack.c.l.bf16 %v2502_v18 }
 0x3c9   : > { %1880 = vmatprep.subr.bf16.mxu0 %v2712_v20  ;;  %1913 = vmatprep.subr.bf16.mxu1 %v2724_v46  ;;  %v2499_v46 = vunpack.c.h.bf16 %v2502_v18 }
 0x3cc   : > { %1881 = vmatpush2.bf16.msra.mxu0 %v2710_v42  ;;  %1914 = vmatpush2.bf16.msra.mxu1 %v2722_v47 }
 0x3cd   : > { %1915 = vmatprep.subr.bf16.mxu1 %v2727_v48 }
 0x3d0   : > { %1916 = vmatpush2.bf16.msra.mxu1 %v2725_v49 }
 0x3d1   : > { %1917 = vmatprep.subr.bf16.mxu1 %v2730_v29 }
 0x3d4   : > { %1918 = vmatpush2.bf16.msra.mxu1 %v2728_v50 }
 0x3d5   : > { %1919 = vmatprep.subr.bf16.mxu1 %v2733_v51 }
 0x3d8   : > { %1920 = vmatpush2.bf16.msra.mxu1 %v2731_v52 }
 0x3d9   : > { %1921 = vmatprep.subr.bf16.mxu1 %v2736_v53 }
 0x3dc   : > { %1922 = vmatpush2.bf16.msra.mxu1 %v2734_v54 }
 0x41c   : > { %v1184_v58 = vpop.permute.xlu0 %1183 }
 0x41d   : > { %v1221_v6 = vmul.f32 %v2486_v60, %v1184_v58 }
 0x41f   : > { %v1229_v35 = vrot.slane %v1221_v6, 4 }
 0x420   : > { %v1189_v63 = vpop.permute.xlu0 %1188 }
 0x421   : > { %v1222_v34 = vmul.f32 %v2487_v59, %v1189_v63  ;;  %v1230_v9 = vadd.f32 %v1229_v35, %v1221_v6 }
 0x423   : > { %v1235_v2 = vrot.slane %v1222_v34, 4  ;;  %v1231_v37 = vrot.slane %v1230_v9, 2 }
 0x424   : > { %v1194_v1 = vpop.permute.xlu0 %1193 }
 0x425   : > { %v1223_v4 = vmul.f32 %v2490_v0, %v1194_v1  ;;  %v1236_v7 = vadd.f32 %v1235_v2, %v1222_v34  ;;  %v1232_v39 = vadd.f32 %v1231_v37, %v1230_v9 }
 0x427   : > { %v1241_v10 = vrot.slane %v1223_v4, 4  ;;  %v1237_v12 = vrot.slane %v1236_v7, 2  ;;  %v1233_v47 = vrot.slane %v1232_v39, 1 }
 0x428   : > { %v1199_v19 = vpop.permute.xlu0 %1198 }
 0x429   : > { %v1224_v8 = vmul.f32 %v2491_v5, %v1199_v19  ;;  %v1242_v36 = vadd.f32 %v1241_v10, %v1223_v4  ;;  %v1238_v28 = vadd.f32 %v1237_v12, %v1236_v7  ;;  %v1234_v60 = vadd.f32 %v1233_v47, %v1232_v39  ;;  %v2737_v47 = vld [vmem:[#allocation3 + $0x268] ss:$20 sps:$4 sm:$0xff]  }
 0x42a   : > { %2503 = vmatprep.subr.bf16.mxu0 %v2737_v47 }
 0x42b   : > { %v1247_v14 = vrot.slane %v1224_v8, 4  ;;  %v1243_v16 = vrot.slane %v1242_v36, 2  ;;  %v1239_v44 = vrot.slane %v1238_v28, 1  ;;  %v1278_v32 = vpack.c.bf16 %v1234_v60, %v1234_v60  ;;  %v2752_v60 = vld [vmem:[#allocation3 + $0x88] ss:$20 sps:$4 sm:$0xff]  }
 0x42c   : > { %v1204_v11 = vpop.permute.xlu0 %1203 }
 0x42d   : > { %v1248_v13 = vadd.f32 %v1247_v14, %v1224_v8  ;;  %v1225_v17 = vmul.f32 %v2494_v21, %v1204_v11  ;;  %v1244_v20 = vadd.f32 %v1243_v16, %v1242_v36  ;;  %v1240_v54 = vadd.f32 %v1239_v44, %v1238_v28  ;;  %v3330_v44 = vpop.f32.mrf.mxu1 }
 0x42f   : > { %v1249_v22 = vrot.slane %v1248_v13, 2  ;;  %v1253_v23 = vrot.slane %v1225_v17, 4  ;;  %v1245_v48 = vrot.slane %v1244_v20, 1  ;;  %v1279_v2 = vpack.c.bf16 %v1240_v54, %v1240_v54  ;;  %v2747_v54 = vld [vmem:[#allocation3 + $0xb0] ss:$20 sps:$4 sm:$0xff]  }
 0x430   : > { %v1209_v27 = vpop.permute.xlu0 %1208 }
 0x431   : > { %v1226_v30 = vmul.f32 %v2495_v15, %v1209_v27  ;;  %v1254_v40 = vadd.f32 %v1253_v23, %v1225_v17  ;;  %v1250_v41 = vadd.f32 %v1249_v22, %v1248_v13  ;;  %v1246_v61 = vadd.f32 %v1245_v48, %v1244_v20  ;;  %v2738_v48 = vld [vmem:[#allocation3 + $0x128] ss:$20 sps:$4 sm:$0xff]  }
 0x432   : > { %v1295_v36 = vunpack.c.l.b16 %v1279_v2  ;;  %v1294_v13 = vunpack.c.l.b16 %v1278_v32  ;;  %v2758_v2 = vld [vmem:[%s3435_s9 + $0x40] ss:$8 sps:$4 sm:$0xff]   ;;  %v2770_v32 = vld [vmem:[%s3435_s9 + $0x24] ss:$8 sps:$4 sm:$0xff]  }
 0x433   : > { %v1259_v42 = vrot.slane %v1226_v30, 4  ;;  %v1255_v25 = vrot.slane %v1254_v40, 2  ;;  %v1251_v29 = vrot.slane %v1250_v41, 1  ;;  %v1280_v10 = vpack.c.bf16 %v1246_v61, %v1246_v61  ;;  %v2753_v61 = vld [vmem:[%s3435_s9 + $0x50] ss:$8 sps:$4 sm:$0xff]  }
 0x434   : > { %v1214_v43 = vpop.permute.xlu0 %1213  ;;  %v1302_v18 = vsel %vm956_vm0, %v1295_v36, %v1294_v13  ;;  %v2776_v36 = vld [vmem:[%s3435_s9 + $0x4] ss:$8 sps:$4 sm:$0xff]   ;;  %v2779_v13 = vld [vmem:[#allocation5 + $0x28] sm:$0xff]  }
 0x435   : > { %v1260_v26 = vadd.f32 %v1259_v42, %v1226_v30  ;;  %v1227_v45 = vmul.f32 %v2498_v38, %v1214_v43  ;;  %v1256_v49 = vadd.f32 %v1255_v25, %v1254_v40  ;;  %v1252_v63 = vadd.f32 %v1251_v29, %v1250_v41  ;;  %v3325_v43 = vld [vmem:[%s3036_s16] sm:$0xf]  ;;  %v2743_v29 = vld [vmem:[%s3435_s9 + $0x70] ss:$8 sps:$4 sm:$0xff]  }
 0x436   : > { %v1296_v12 = vunpack.c.l.b16 %v1280_v10  ;;  %v2763_v10 = vld [vmem:[%s3435_s9 + $0x30] ss:$8 sps:$4 sm:$0xff]  }
 0x437   : > { %v1261_v50 = vrot.slane %v1260_v26, 2  ;;  %v1265_v51 = vrot.slane %v1227_v45, 4  ;;  %v1257_v52 = vrot.slane %v1256_v49, 1  ;;  %v1281_v19 = vpack.c.bf16 %v1252_v63, %v1252_v63  ;;  %v2755_v63 = vld [vmem:[%s3435_s9 + $0x54] ss:$8 sps:$4 sm:$0xff]  }
 0x438   : > { %v1219_v53 = vpop.permute.xlu0 %1218  ;;  %v1303_v27 = vsel %vm958_vm1, %v1296_v12, %v1302_v18  ;;  %v2778_v12 = vld [vmem:[#allocation5 + $0x30] sm:$0xff]  }
 0x439   : > { %v1262_v33 = vadd.f32 %v1261_v50, %v1260_v26  ;;  %v1266_v58 = vadd.f32 %v1265_v51, %v1227_v45  ;;  %v1228_v59 = vmul.f32 %v2499_v46, %v1219_v53  ;;  %v1258_v1 = vadd.f32 %v1257_v52, %v1256_v49  ;;  %v3332_v26 = vpop.f32.mrf.mxu1  ;;  %v2739_v49 = vld [vmem:[#allocation3 + $0x240] ss:$20 sps:$4 sm:$0xff]   ;;  %v2741_v51 = vld [vmem:[#allocation3 + $0x218] ss:$20 sps:$4 sm:$0xff]   ;;  %v2746_v53 = vld [vmem:[#allocation3 + $0x1f0] ss:$20 sps:$4 sm:$0xff]  }
 0x43a   : > { %v1297_v15 = vunpack.c.l.b16 %v1281_v19  ;;  %v2740_v50 = vld [vmem:[#allocation3 + $0x100] ss:$20 sps:$4 sm:$0xff]   ;;  %v2742_v52 = vld [vmem:[#allocation3 + $0xd8] ss:$20 sps:$4 sm:$0xff]   ;;  %v2767_v19 = vld [vmem:[#allocation3 + $0x10] ss:$20 sps:$4 sm:$0xff]  }
 0x43b   : > { %v1263_v34 = vrot.slane %v1262_v33, 1  ;;  %v1267_v0 = vrot.slane %v1266_v58, 2  ;;  %v1271_v6 = vrot.slane %v1228_v59, 4  ;;  %v1282_v9 = vpack.c.bf16 %v1258_v1, %v1258_v1  ;;  %v766_v45 = vpop.f32.mrf.mxu1  ;;  %v2761_v1 = vld [vmem:[#allocation3 + $0x178] ss:$20 sps:$4 sm:$0xff]  }
 0x43c   : > { %v1304_v30 = vsel %vm960_vm2, %v1297_v15, %v1303_v27  ;;  %v3390_v15 = vld [vmem:[%s3434_s8] sm:$0x1f] }
 0x43d   : > { %v1264_v4 = vadd.f32 %v1263_v34, %v1262_v33  ;;  %v1268_v5 = vadd.f32 %v1267_v0, %v1266_v58  ;;  %v1272_v35 = vadd.f32 %v1271_v6, %v1228_v59  ;;  %v1298_v17 = vunpack.c.l.b16 %v1282_v9  ;;  %v767_v46 = vpop.f32.mrf.mxu1  ;;  %v2750_v33 = vld [vmem:[%s3435_s9 + $0x64] ss:$8 sps:$4 sm:$0xff]   ;;  %v2748_v58 = vld [vmem:[%s3435_s9 + $0x60] ss:$8 sps:$4 sm:$0xff]   ;;  %v2771_v9 = vld [vmem:[%s3435_s9 + $0x10] ss:$8 sps:$4 sm:$0xff]  }
 0x43e   : > { %v2751_v59 = vld [vmem:[#allocation3 + $0x1c8] ss:$20 sps:$4 sm:$0xff]   ;;  %v2756_v34 = vld [vmem:[#allocation3 + $0x1a0] ss:$20 sps:$4 sm:$0xff]   ;;  %v1412_v18 = vrot.slane %v3390_v15, %v3107_v24 }
 0x43f   : > { %v1269_v7 = vrot.slane %v1268_v5, 1  ;;  %v1273_v8 = vrot.slane %v1272_v35, 2  ;;  %v1283_v21 = vpack.c.bf16 %v1264_v4, %v1264_v4  ;;  %v1305_v39 = vsel %vm962_vm3, %v1298_v17, %v1304_v30  ;;  %v2757_v0 = vld [vmem:[#allocation3 + $0x60] ss:$20 sps:$4 sm:$0xff]   ;;  %v2760_v6 = vld [vmem:[%s3435_s9 + $0x44] ss:$8 sps:$4 sm:$0xff]  }
 0x440   : > { %v2765_v4 = vld [vmem:[%s3435_s9 + $0x34] ss:$8 sps:$4 sm:$0xff]  }
 0x441   : > { %v1270_v14 = vadd.f32 %v1269_v7, %v1268_v5  ;;  %v1274_v11 = vadd.f32 %v1273_v8, %v1272_v35  ;;  %v1299_v22 = vunpack.c.l.b16 %v1283_v21  ;;  %v2762_v5 = vld [vmem:[#allocation3 + $0x38] ss:$20 sps:$4 sm:$0xff]   ;;  %v2766_v35 = vld [vmem:[#allocation3 + $0x150] ss:$20 sps:$4 sm:$0xff]  }
 0x442   : > { %v2768_v7 = vld [vmem:[%s3435_s9 + $0x20] ss:$8 sps:$4 sm:$0xff]   ;;  %v2773_v8 = vld [vmem:[%s3435_s9 + $0x14] ss:$8 sps:$4 sm:$0xff]  }
 0x443   : > { %v1284_v37 = vpack.c.bf16 %v1270_v14, %v1270_v14  ;;  %v1275_v16 = vrot.slane %v1274_v11, 1  ;;  %v1306_v40 = vsel %vm964_vm4, %v1299_v22, %v1305_v39  ;;  %v2774_v21 = vld [vmem:[%s3435_s9] ss:$8 sps:$4 sm:$0xff]   ;;  %v1416_v39 = vrot.slane %v3390_v15, %v3175_v56 }
 0x444   : > { %v2777_v14 = vld [vmem:[#allocation5 + $0x38] sm:$0xff]  }
 0x445   : > { %v1276_v23 = vadd.f32 %v1275_v16, %v1274_v11  ;;  %v1300_v28 = vunpack.c.l.b16 %v1284_v37  ;;  %v2907_v11 = vmov 0.0   ;;  %v2780_v37 = vld [vmem:[#allocation5 + $0x20] sm:$0xff]   ;;  %v2829_v16 = vld [vmem:[%s3432_s6] sm:$0xf] }
 0x446   : > { %v514_v17 = vrot.slane %v2829_v16, %v3175_v56  ;;  %v2781_v22 = vld [vmem:[#allocation5 + $0x18] sm:$0xff]  }
 0x447   : > { %v1285_v38 = vpack.c.bf16 %v1276_v23, %v1276_v23  ;;  %v1307_v41 = vsel %vm966_vm5, %v1300_v28, %v1306_v40  ;;  %v2782_v28 = vld [vmem:[#allocation5 + $0x10] sm:$0xff]  }
 0x448   : > { %v724_v30 = vadd.f32 %v3114_v31, %v514_v17 }
 0x449   : > { %v1301_v20 = vunpack.c.l.b16 %v1285_v38 }
 0x44b   : > { %v1308_v42 = vsel %vm968_vm6, %v1301_v20, %v1307_v41  ;;  %v518_v41 = vrot.slane %v2829_v16, %v3172_v55 }
 0x44c   : > { %v1309_v25 = vpack.c.b16 %v1308_v42, %v1308_v42 }
 0x44d   : > { %v763_v47 = vadd.f32 %v3330_v44, %v518_v41 }
 0x44e   : > { %1882 = vmatprep.mubr.bf16.mxu0 %v1309_v25  ;;  %1923 = vmatprep.mubr.bf16.mxu1 %v1309_v25 }
 0x44f   : > { %1883 = vmatmul.mubr.bf16.vlgmr.msra.gmra.mxu0 %v3325_v43  ;;  %1924 = vmatmul.mubr.bf16.vlgmr.msra.gmra.mxu1 %v3325_v43 }
 0x450   : > { %1964 = vmatprep.mubr.bf16.mxu0 %v1309_v25  ;;  %2122 = vmatprep.mubr.bf16.mxu1 %v2905_v3  ;;  %v2745_v3 = vld [vmem:[%s3435_s9 + $0x74] ss:$8 sps:$4 sm:$0xff]  }
 0x451   : > { %2504 = vmatpush3.bf16.msra.mxu0 %v2738_v48  ;;  %2090 = vmatprep.subr.bf16.mxu1 %v2745_v3  ;;  %v522_v3 = vrot.slane %v2829_v16, %v3178_v57 }
 0x452   : > { %2505 = vmatprep.subr.bf16.mxu0 %v2739_v49  ;;  %2091 = vmatpush1.bf16.msra.mxu1 %v2743_v29 }
 0x453   : > { %2092 = vmatprep.subr.bf16.mxu1 %v2750_v33 }
 0x455   : > { %2506 = vmatpush3.bf16.msra.mxu0 %v2740_v50 }
 0x456   : > { %2507 = vmatprep.subr.bf16.mxu0 %v2741_v51  ;;  %2093 = vmatpush1.bf16.msra.mxu1 %v2748_v58  ;;  %v1420_v51 = vrot.slane %v3390_v15, %v3172_v55 }
 0x457   : > { %2094 = vmatprep.subr.bf16.mxu1 %v2755_v63 }
 0x459   : > { %2508 = vmatpush3.bf16.msra.mxu0 %v2742_v52 }
 0x45a   : > { %2509 = vmatprep.subr.bf16.mxu0 %v2746_v53  ;;  %2095 = vmatpush1.bf16.msra.mxu1 %v2753_v61  ;;  %v765_v53 = vadd.f32 %v3332_v26, %v522_v3 }
 0x45b   : > { %2096 = vmatprep.subr.bf16.mxu1 %v2760_v6 }
 0x45d   : > { %2510 = vmatpush3.bf16.msra.mxu0 %v2747_v54 }
 0x45e   : > { %2511 = vmatprep.subr.bf16.mxu0 %v2751_v59  ;;  %2097 = vmatpush1.bf16.msra.mxu1 %v2758_v2 }
 0x45f   : > { %2098 = vmatprep.subr.bf16.mxu1 %v2765_v4 }
 0x461   : > { %2512 = vmatpush3.bf16.msra.mxu0 %v2752_v60 }
 0x462   : > { %2513 = vmatprep.subr.bf16.mxu0 %v2756_v34  ;;  %2099 = vmatpush1.bf16.msra.mxu1 %v2763_v10  ;;  %v2830_v34 = vld [vmem:[#allocation2] sm:$0xff]  ;;  %v2784_v10 = vld [vmem:[#allocation5] sm:$0xff]  }
 0x463   : > { %2100 = vmatprep.subr.bf16.mxu1 %v2770_v32  ;;  %v1424_v32 = vrot.slane %v3390_v15, %v3178_v57 }
 0x465   : > { %2514 = vmatpush3.bf16.msra.mxu0 %v2757_v0 }
 0x466   : > { %2515 = vmatprep.subr.bf16.mxu0 %v2761_v1  ;;  %2101 = vmatpush1.bf16.msra.mxu1 %v2768_v7 }
 0x467   : > { %2102 = vmatprep.subr.bf16.mxu1 %v2773_v8 }
 0x469   : > { %2516 = vmatpush3.bf16.msra.mxu0 %v2762_v5 }
 0x46a   : > { %2517 = vmatprep.subr.bf16.mxu0 %v2766_v35  ;;  %2103 = vmatpush1.bf16.msra.mxu1 %v2771_v9  ;;  %v2783_v35 = vld [vmem:[#allocation5 + $0x8] sm:$0xff]  }
 0x46b   : > { %2104 = vmatprep.subr.bf16.mxu1 %v2776_v36 }
 0x46d   : > { %2518 = vmatpush3.bf16.msra.mxu0 %v2767_v19  ;;  %v1428_v19 = vrot.slane %v3390_v15, %v3184_v62 }
 0x46e   : > { %2534 = vmatprep.subr.bf16.mxu0 %v2907_v11  ;;  %2105 = vmatpush1.bf16.msra.mxu1 %v2774_v21 }
 0x470   : > { %1965 = vmatmul.mubr.bf16.vlgmr.msra.gmra.mxu0 %v3325_v43 }
 0x471   : > { %2535 = vmatpush3.bf16.msra.mxu0 %v2777_v14  ;;  %2550 = vmatprep.mubr.msk.bf16.mxu0 %vm2908_vm8, %v2907_v11 }
 0x472   : > { %2536 = vmatprep.subr.bf16.mxu0 %v2907_v11 }
 0x475   : > { %2537 = vmatpush3.bf16.msra.mxu0 %v2778_v12 }
 0x476   : > { %2538 = vmatprep.subr.bf16.mxu0 %v2907_v11 }
 0x479   : > { %2539 = vmatpush3.bf16.msra.mxu0 %v2779_v13 }
 0x47a   : > { %2540 = vmatprep.subr.bf16.mxu0 %v2907_v11 }
 0x47d   : > { %2541 = vmatpush3.bf16.msra.mxu0 %v2780_v37 }
 0x47e   : > { %2542 = vmatprep.subr.bf16.mxu0 %v2907_v11 }
 0x481   : > { %2543 = vmatpush3.bf16.msra.mxu0 %v2781_v22 }
 0x482   : > { %2544 = vmatprep.subr.bf16.mxu0 %v2907_v11 }
 0x485   : > { %2545 = vmatpush3.bf16.msra.mxu0 %v2782_v28 }
 0x486   : > { %2546 = vmatprep.subr.bf16.mxu0 %v2907_v11 }
 0x489   : > { %2547 = vmatpush3.bf16.msra.mxu0 %v2783_v35 }
 0x48a   : > { %2548 = vmatprep.subr.bf16.mxu0 %v2907_v11  ;;  %v2473_v11 = vld [vmem:[%s3437_s11] ss:$0 sm:$0xff] }
 0x48d   : > { %2549 = vmatpush3.bf16.msra.mxu0 %v2784_v10 }
 0x50f   : > { %v1884_v23 = vpop.f32.mrf.mxu0  ;;  %v1925_v27 = vpop.f32.mrf.mxu1 }
 0x510   : > { %v1885_v38 = vadd.f32 %v1884_v23, %v1412_v18  ;;  %v1926_v54 = vadd.f32 %v1925_v27, %v1420_v51 }
 0x511   : > { %v1886_v20 = vpop.f32.mrf.mxu0  ;;  %v1927_v40 = vpop.f32.mrf.mxu1 }
 0x512   : > { %v1972_v24 = vadd.f32 %v1885_v38, %v724_v30  ;;  %v1887_v45 = vadd.f32 %v1886_v20, %v1416_v39  ;;  %v1928_v8 = vadd.f32 %v1927_v40, %v1424_v32 }
 0x513   : > { %v1888_v42 = vpop.f32.mrf.mxu0  ;;  %v1929_v25 = vpop.f32.mrf.mxu1 }
 0x514   : > { %v2455_v43 = vmul.f32 -1.442695, %v1972_v24  ;;  %v1979_v56 = vadd.f32 %v1887_v45, %v763_v47 }
 0x515   : > { %v1889_v46 = vpop.f32.mrf.mxu0  ;;  %v1930_v31 = vpop.f32.mrf.mxu1 }
 0x516   : > { %2819 = vpow2.f32 %v2455_v43  ;;  %v2456_v48 = vmul.f32 -1.442695, %v1979_v56 }
 0x518   : > { %2821 = vpow2.f32 %v2456_v48 }
 0x523   : > { %v2820_v49 = vpop.eup %2819 }
 0x524   : > { %v1976_v29 = vadd.f32 1.0, %v2820_v49 }
 0x525   : > { %v2822_v50 = vpop.eup %2821 }
 0x526   : > { %2823 = vrcp.f32 %v1976_v29  ;;  %v1983_v52 = vadd.f32 1.0, %v2822_v50 }
 0x528   : > { %2825 = vrcp.f32 %v1983_v52 }
 0x530   : > { %v2519_v55 = vpop.f32.mrf.mxu0 }
 0x532   : > { %v2520_v26 = vpop.f32.mrf.mxu0 }
 0x533   : > { %v2824_v33 = vpop.eup %2823  ;;  %v2521_v2 = vadd.f32 %v2520_v26, %v2519_v55 }
 0x534   : > { %v1986_v44 = vmul.f32 %v2824_v33, %v765_v53  ;;  %v2522_v4 = vpop.f32.mrf.mxu0 }
 0x535   : > { %v2826_v59 = vpop.eup %2825  ;;  %v1967_v9 = vadd.f32 %v2521_v2, %v1428_v19 }
 0x536   : > { %v1987_v58 = vadd.f32 %v1986_v44, %v1926_v54  ;;  %v1989_v60 = vsub.f32 1.0, %v2826_v59  ;;  %v1991_v0 = vmul.f32 %v2830_v34, %v2826_v59  ;;  %v2523_v5 = vpop.f32.mrf.mxu0 }
 0x538   : > { %2827 = vtanh.f32 %v1987_v58 }
 0x545   : > { %v2828_v61 = vpop.eup %2827 }
 0x546   : > { %v1990_v63 = vmul.f32 %v2828_v61, %v1989_v60 }
 0x548   : > { %v1992_v6 = vadd.f32 %v1991_v0, %v1990_v63 }
 0x54a   : > { %v1993_v1 = vpack.c.bf16 %v1992_v6, %v1992_v6  ;;  %2247 = vst [vmem:[#allocation2] sm:$0xff] %v1992_v6  ;;  %2248 = vst [vmem:[%s3439_s13] sm:$0xff] %v1992_v6 }
 0x54c   : > { %2123 = vmatmul.mubr.bf16.vlgmr.msra.gmra.mxu1 %v1993_v1 }
 0x60c   : > { %v2124_v7 = vpop.f32.mrf.mxu1 }
 0x60d   : > { %v2131_v21 = vadd.f32 %v2124_v7, %v1928_v8 }
 0x60e   : > { %v2126_v36 = vpop.f32.mrf.mxu1 }
 0x60f   : > { %v2132_v14 = vadd.f32 %v2126_v36, %v1967_v9 }
 0x610   : > { %v2128_v12 = vpop.f32.mrf.mxu1 }
 0x611   : > { %v2133_v13 = vmax.f32 %v2131_v21, %v2132_v14 }
 0x612   : > { %v2129_v37 = vpop.f32.mrf.mxu1 }
 0x613   : > { %v2134_v16 = vpack.c.bf16 %v2133_v13, %v2133_v13 }
 0x615   : > { %2551 = vmatmul.mubr.bf16.vlgmr.msra.gmra.mxu0 %v2134_v16 }
 0x6d5   : > { %v2240_v57 = vpop.f32.mrf.mxu0 }
 0x6d6   : > { %v2241_v17 = vadd.f32 %v2473_v11, %v2240_v57 }
 0x6d7   : > { %v2552_v18 = vpop.f32.mrf.mxu0 }
 0x6d8   : > { %2246 = vst [vmem:[%s3041_s19] sm:$0xff] %v2241_v17 }
 0x6d9   : > { %v2243_v62 = vpop.f32.mrf.mxu0 }
 0x6db   : > { %v2553_v15 = vpop.f32.mrf.mxu0 }
 0x6dc PF: > { %s26_s25 = sadd.s32 1, %s2897_s25  }
 0x6dd   : > { %p23_p4 = scmp.ge.s32.totalorder %s26_s25, 6  }
 0x6df   :  { %25 = sbr.rel (!%p23_p4) target bundleno = 2 (0x2), region = 119 }
 0x6e4   :  { %2274 = vsyncpa [#allocation4], 1 }
 0x6e5   :  { %2276 = vsyncpa [#allocation4 + $0x1], 1 }
 0x6e6   :  { %2277 = vsyncpa [#allocation6], 1 }

</bundles_post_ra>
